<compile_context>
chip_gen: v7x
topology: tpu7x:2x2x1
jax: 0.10.0
libtpu: 0.0.40
codegen_flags: <defaults>
</compile_context>

<pallas_src>
import functools
import math

import jax
import jax.numpy as jnp
from jax import lax
from jax.experimental import pallas as pl
from jax.experimental.pallas import tpu as pltpu


# ---------------------------------------------------------------------------
# Fused kernel: mapping + QKV + MHA + out-proj + BN1/res + MLP + BN2/res
#               + token-mean + L2 normalize.  Everything stays in VMEM.
# ---------------------------------------------------------------------------
def _text_encoder_kernel(feat_ref, mask_ref, wmap_ref, bmap_ref,
                         wqkv_ref, bqkv_ref, wo_ref, bo_ref,
                         g1_ref, be1_ref, wfc1_ref, bfc1_ref,
                         wfc2_ref, bfc2_ref, g2_ref, be2_ref,
                         o_ref, att_ref, *, batch, tokens, heads, eps):
    D = wmap_ref.shape[1]
    dk = D // heads

    # x = mapping(bert_feat): all B*T rows in one MXU matmul (bf16 in, f32 acc)
    feat = feat_ref[...].astype(jnp.bfloat16)                          # (N, HB)
    x = jnp.dot(feat, wmap_ref[...],
                preferred_element_type=jnp.float32) + bmap_ref[...]    # (N, D)

    # fused q/k/v projection; the 1/sqrt(dk) scale is pre-folded into q.
    qkv = jnp.dot(x.astype(jnp.bfloat16), wqkv_ref[...],
                  preferred_element_type=jnp.float32) + bqkv_ref[...]  # (N, 3D)

    # Multi-head attention over all batches at once: block-diagonal additive
    # mask keeps the per-batch (T,T) softmaxes independent.  Each head's
    # context lands in its lane-aligned 128-wide slice of the bf16 att slab so
    # the output projection is a single full-width K=D matmul.
    mask = mask_ref[...]                                               # (N, N) f32
    for h in range(heads):
        lo = h * dk
        q_h = qkv[:, lo:lo + dk].astype(jnp.bfloat16)                  # (N, dk)
        k_h = qkv[:, D + lo:D + lo + dk].astype(jnp.bfloat16)
        v_h = qkv[:, 2 * D + lo:2 * D + lo + dk].astype(jnp.bfloat16)

        # scores: contract dk axes directly (transposed-K operand is free at
        # this size).  TODO(synk): pre-transpose K if T grows to 128-512.
        s = lax.dot_general(q_h, k_h, (((1,), (1,)), ((), ())),
                            preferred_element_type=jnp.float32)        # (N, N)
        s = s + mask
        s = s - jnp.max(s, axis=-1, keepdims=True)
        p = jnp.exp(s)
        p = p / jnp.sum(p, axis=-1, keepdims=True)                     # exact softmax
        att_ref[:, lo:lo + dk] = jnp.dot(
            p.astype(jnp.bfloat16), v_h,
            preferred_element_type=jnp.float32).astype(jnp.bfloat16)

    att_o = jnp.dot(att_ref[...], wo_ref[...],
                    preferred_element_type=jnp.float32) + bo_ref[...]  # (N, D)

    # agsa_emb = x + BN1(att_o)   (training-mode biased batch stats over N rows)
    m1 = jnp.mean(att_o, axis=0, keepdims=True)
    c1 = att_o - m1
    v1 = jnp.mean(c1 * c1, axis=0, keepdims=True)
    agsa = x + (c1 * lax.rsqrt(v1 + eps) * g1_ref[...] + be1_ref[...])

    # fc2(relu(fc1(agsa)))   (dropout p=0 -> identity); h1 never leaves VMEM.
    h1 = jnp.maximum(
        jnp.dot(agsa.astype(jnp.bfloat16), wfc1_ref[...],
                preferred_element_type=jnp.float32) + bfc1_ref[...], 0.0)
    y = jnp.dot(h1.astype(jnp.bfloat16), wfc2_ref[...],
                preferred_element_type=jnp.float32) + bfc2_ref[...]

    # x = agsa_emb + BN2(y)
    m2 = jnp.mean(y, axis=0, keepdims=True)
    c2 = y - m2
    v2 = jnp.mean(c2 * c2, axis=0, keepdims=True)
    out = agsa + (c2 * lax.rsqrt(v2 + eps) * g2_ref[...] + be2_ref[...])

    # cap_emb = mean over tokens, then F.normalize(p=2, dim=-1); one store.
    cap = jnp.mean(out.reshape(batch, tokens, D), axis=1)              # (B, D)
    nrm = jnp.sum(cap * cap, axis=-1, keepdims=True)
    o_ref[...] = cap * lax.rsqrt(jnp.maximum(nrm, 1e-24))


def _full_spec(arr):
    # whole array as one block (shapes here equal the full array dims)
    return pl.BlockSpec(arr.shape, lambda i: (0,) * arr.ndim)


def text_encoder_forward(bert_feat, prep, *, heads, eps=1e-5):
    """bert_feat: (B, T, bert_hidden) -- stand-in for BERT's last encoder layer."""
    B, T, HB = bert_feat.shape
    D = prep["w_map"].shape[1]
    feat = bert_feat.reshape(B * T, HB)

    ins = (feat, prep["attn_mask"],
           prep["w_map"], prep["b_map"], prep["w_qkv"], prep["b_qkv"],
           prep["w_o"], prep["b_o"], prep["bn1_gamma"], prep["bn1_beta"],
           prep["w_fc1"], prep["b_fc1"], prep["w_fc2"], prep["b_fc2"],
           prep["bn2_gamma"], prep["bn2_beta"])

    kernel = functools.partial(_text_encoder_kernel, batch=B, tokens=T,
                               heads=heads, eps=eps)
    return pl.pallas_call(
        kernel,
        out_shape=jax.ShapeDtypeStruct((B, D), jnp.float32),
        grid=(1,),
        in_specs=[_full_spec(a) for a in ins],
        out_specs=pl.BlockSpec((B, D), lambda i: (0, 0)),
        scratch_shapes=[pltpu.VMEM((B * T, D), jnp.bfloat16)],   # per-head att slab
        compiler_params=pltpu.CompilerParams(
            dimension_semantics=("arbitrary",)),
    )(*ins)


# ------------------------- one-time parameter prep -------------------------
def prepare_params(params, *, batch, tokens, heads):
    """Hoists all per-call weight prep (concat, scale fold, bf16 casts, mask)
    out of the forward path."""
    D = params["w_map"].shape[1]
    Dh = params["w_fc1"].shape[1]
    dk = D // heads
    scale = 1.0 / math.sqrt(dk)
    bf16 = jnp.bfloat16
    N = batch * tokens

    w_qkv = jnp.concatenate(
        [params["w_q"] * scale, params["w_k"], params["w_v"]], axis=1)
    b_qkv = jnp.concatenate(
        [params["b_q"] * scale, params["b_k"], params["b_v"]], axis=0)

    # block-diagonal additive mask: 0 within a batch's T tokens, -1e30 across.
    bids = jnp.arange(N, dtype=jnp.int32) // tokens
    attn_mask = jnp.where(bids[:, None] == bids[None, :],
                          0.0, -1e30).astype(jnp.float32)

    return {
        "attn_mask": attn_mask,
        "w_map": params["w_map"].astype(bf16), "b_map": params["b_map"].reshape(1, D),
        "w_qkv": w_qkv.astype(bf16), "b_qkv": b_qkv.reshape(1, 3 * D),
        "w_o": params["w_o"].astype(bf16), "b_o": params["b_o"].reshape(1, D),
        "bn1_gamma": params["bn1_gamma"].reshape(1, D),
        "bn1_beta": params["bn1_beta"].reshape(1, D),
        "w_fc1": params["w_fc1"].astype(bf16), "b_fc1": params["b_fc1"].reshape(1, Dh),
        "w_fc2": params["w_fc2"].astype(bf16), "b_fc2": params["b_fc2"].reshape(1, D),
        "bn2_gamma": params["bn2_gamma"].reshape(1, D),
        "bn2_beta": params["bn2_beta"].reshape(1, D),
    }


def init_params(key, bert_hidden, embed_size, hidden_size):
    ks = jax.random.split(key, 8)

    def w(k, shape):
        return (jax.random.normal(k, shape, jnp.float32) * 0.05).astype(jnp.float32)

    D = embed_size
    return {
        "w_map": w(ks[0], (bert_hidden, D)), "b_map": jnp.zeros((D,), jnp.float32),
        "w_q": w(ks[1], (D, D)), "b_q": jnp.zeros((D,), jnp.float32),
        "w_k": w(ks[2], (D, D)), "b_k": jnp.zeros((D,), jnp.float32),
        "w_v": w(ks[3], (D, D)), "b_v": jnp.zeros((D,), jnp.float32),
        "w_o": w(ks[4], (D, D)), "b_o": jnp.zeros((D,), jnp.float32),
        "bn1_gamma": jnp.ones((D,), jnp.float32), "bn1_beta": jnp.zeros((D,), jnp.float32),
        "w_fc1": w(ks[5], (D, hidden_size)), "b_fc1": jnp.zeros((hidden_size,), jnp.float32),
        "w_fc2": w(ks[6], (hidden_size, D)), "b_fc2": jnp.zeros((D,), jnp.float32),
        "bn2_gamma": jnp.ones((D,), jnp.float32), "bn2_beta": jnp.zeros((D,), jnp.float32),
    }


if __name__ == "__main__":
    B, T = 2, 8                # batch, tokens  (B*T = 16 rows per matmul)
    BERT_HIDDEN = 128          # stand-in bert_config.hidden_size
    EMBED_SIZE = 256           # embed_size (== hidden_size in the module)
    HEADS = 2                  # -> dk = 128 (lane-dense heads)

    key = jax.random.PRNGKey(0)
    k_feat, k_param = jax.random.split(key)
    # TODO(synk): stand-in for the frozen BertModel's last encoder layer output.
    bert_feat = jax.random.normal(k_feat, (B, T, BERT_HIDDEN), jnp.float32)
    params = init_params(k_param, BERT_HIDDEN, EMBED_SIZE, EMBED_SIZE)

    # One-time weight prep (concat / scale fold / bf16 casts / mask) -- not on
    # the per-forward path.
    prep = prepare_params(params, batch=B, tokens=T, heads=HEADS)

    fwd = jax.jit(functools.partial(text_encoder_forward, heads=HEADS))
    out = jax.block_until_ready(fwd(bert_feat, prep))

    assert out.shape == (B, EMBED_SIZE), out.shape
    # L2-normalized rows should have unit norm.
    norms = jnp.sqrt(jnp.sum(out * out, axis=-1))
    assert bool(jnp.all(jnp.abs(norms - 1.0) < 1e-3)), norms
    print("KERNEL_OK")
</pallas_src>

<mosaic_0001>
module attributes {stable_mosaic.version = 11 : i64} {
  func.func @_text_encoder_kernel(%arg0: i32, %arg1: memref<16x128xf32, #tpu.memory_space<vmem>>, %arg2: memref<16x16xf32, #tpu.memory_space<vmem>>, %arg3: memref<128x256xbf16, #tpu.memory_space<vmem>>, %arg4: memref<1x256xf32, #tpu.memory_space<vmem>>, %arg5: memref<256x768xbf16, #tpu.memory_space<vmem>>, %arg6: memref<1x768xf32, #tpu.memory_space<vmem>>, %arg7: memref<256x256xbf16, #tpu.memory_space<vmem>>, %arg8: memref<1x256xf32, #tpu.memory_space<vmem>>, %arg9: memref<1x256xf32, #tpu.memory_space<vmem>>, %arg10: memref<1x256xf32, #tpu.memory_space<vmem>>, %arg11: memref<256x256xbf16, #tpu.memory_space<vmem>>, %arg12: memref<1x256xf32, #tpu.memory_space<vmem>>, %arg13: memref<256x256xbf16, #tpu.memory_space<vmem>>, %arg14: memref<1x256xf32, #tpu.memory_space<vmem>>, %arg15: memref<1x256xf32, #tpu.memory_space<vmem>>, %arg16: memref<1x256xf32, #tpu.memory_space<vmem>>, %arg17: memref<2x256xf32, #tpu.memory_space<vmem>>, %arg18: memref<16x256xbf16, #tpu.memory_space<vmem>>) attributes {dimension_semantics = [#tpu.dimension_semantics<arbitrary>], iteration_bounds = array<i64: 1>, scalar_prefetch = 0 : i64, scratch_operands = 1 : i64, tpu.core_type = #tpu.core_type<tc>, window_params = [{pipeline_mode = #tpu.pipeline_mode<synchronous>, transform_indices = @transform_0, window_bounds = array<i64: 16, 128>}, {pipeline_mode = #tpu.pipeline_mode<synchronous>, transform_indices = @transform_1, window_bounds = array<i64: 16, 16>}, {pipeline_mode = #tpu.pipeline_mode<synchronous>, transform_indices = @transform_2, window_bounds = array<i64: 128, 256>}, {pipeline_mode = #tpu.pipeline_mode<synchronous>, transform_indices = @transform_3, window_bounds = array<i64: 1, 256>}, {pipeline_mode = #tpu.pipeline_mode<synchronous>, transform_indices = @transform_4, window_bounds = array<i64: 256, 768>}, {pipeline_mode = #tpu.pipeline_mode<synchronous>, transform_indices = @transform_5, window_bounds = array<i64: 1, 768>}, {pipeline_mode = #tpu.pipeline_mode<synchronous>, transform_indices = @transform_6, window_bounds = array<i64: 256, 256>}, {pipeline_mode = #tpu.pipeline_mode<synchronous>, transform_indices = @transform_7, window_bounds = array<i64: 1, 256>}, {pipeline_mode = #tpu.pipeline_mode<synchronous>, transform_indices = @transform_8, window_bounds = array<i64: 1, 256>}, {pipeline_mode = #tpu.pipeline_mode<synchronous>, transform_indices = @transform_9, window_bounds = array<i64: 1, 256>}, {pipeline_mode = #tpu.pipeline_mode<synchronous>, transform_indices = @transform_10, window_bounds = array<i64: 256, 256>}, {pipeline_mode = #tpu.pipeline_mode<synchronous>, transform_indices = @transform_11, window_bounds = array<i64: 1, 256>}, {pipeline_mode = #tpu.pipeline_mode<synchronous>, transform_indices = @transform_12, window_bounds = array<i64: 256, 256>}, {pipeline_mode = #tpu.pipeline_mode<synchronous>, transform_indices = @transform_13, window_bounds = array<i64: 1, 256>}, {pipeline_mode = #tpu.pipeline_mode<synchronous>, transform_indices = @transform_14, window_bounds = array<i64: 1, 256>}, {pipeline_mode = #tpu.pipeline_mode<synchronous>, transform_indices = @transform_15, window_bounds = array<i64: 1, 256>}, {pipeline_mode = #tpu.pipeline_mode<synchronous>, transform_indices = @transform_16, window_bounds = array<i64: 2, 256>}]} {
    %c0 = arith.constant 0 : index
    %c0_0 = arith.constant 0 : index
    %0 = vector.load %arg1[%c0, %c0_0] : memref<16x128xf32, #tpu.memory_space<vmem>>, vector<16x128xf32>
    %1 = arith.truncf %0 : vector<16x128xf32> to vector<16x128xbf16>
    %c0_1 = arith.constant 0 : index
    %c0_2 = arith.constant 0 : index
    %2 = vector.load %arg3[%c0_1, %c0_2] : memref<128x256xbf16, #tpu.memory_space<vmem>>, vector<128x256xbf16>
    %cst = arith.constant dense<0.000000e+00> : vector<16x256xf32>
    %3 = tpu.matmul %1, %2, %cst {dimension_numbers = #tpu.dot_dimension_numbers<[1], [0], [0], [1], [0, 0, 1, 1], [], []>} : vector<16x128xbf16>, vector<128x256xbf16>, vector<16x256xf32> -> vector<16x256xf32>
    %c0_3 = arith.constant 0 : index
    %c0_4 = arith.constant 0 : index
    %4 = vector.load %arg4[%c0_3, %c0_4] : memref<1x256xf32, #tpu.memory_space<vmem>>, vector<1x256xf32>
    %5 = vector.broadcast %4 : vector<1x256xf32> to vector<16x256xf32>
    %6 = arith.addf %3, %5 : vector<16x256xf32>
    %7 = arith.truncf %6 : vector<16x256xf32> to vector<16x256xbf16>
    %c0_5 = arith.constant 0 : index
    %c0_6 = arith.constant 0 : index
    %8 = vector.load %arg5[%c0_5, %c0_6] : memref<256x768xbf16, #tpu.memory_space<vmem>>, vector<256x768xbf16>
    %cst_7 = arith.constant dense<0.000000e+00> : vector<16x768xf32>
    %9 = tpu.matmul %7, %8, %cst_7 {dimension_numbers = #tpu.dot_dimension_numbers<[1], [0], [0], [1], [0, 0, 1, 1], [], []>} : vector<16x256xbf16>, vector<256x768xbf16>, vector<16x768xf32> -> vector<16x768xf32>
    %c0_8 = arith.constant 0 : index
    %c0_9 = arith.constant 0 : index
    %10 = vector.load %arg6[%c0_8, %c0_9] : memref<1x768xf32, #tpu.memory_space<vmem>>, vector<1x768xf32>
    %11 = vector.broadcast %10 : vector<1x768xf32> to vector<16x768xf32>
    %12 = arith.addf %9, %11 : vector<16x768xf32>
    %c0_10 = arith.constant 0 : index
    %c0_11 = arith.constant 0 : index
    %13 = vector.load %arg2[%c0_10, %c0_11] : memref<16x16xf32, #tpu.memory_space<vmem>>, vector<16x16xf32>
    %14 = vector.extract_strided_slice %12 {offsets = [0, 0], sizes = [16, 128], strides = [1, 1]} : vector<16x768xf32> to vector<16x128xf32>
    %15 = arith.truncf %14 : vector<16x128xf32> to vector<16x128xbf16>
    %16 = vector.extract_strided_slice %12 {offsets = [0, 256], sizes = [16, 128], strides = [1, 1]} : vector<16x768xf32> to vector<16x128xf32>
    %17 = arith.truncf %16 : vector<16x128xf32> to vector<16x128xbf16>
    %18 = vector.extract_strided_slice %12 {offsets = [0, 512], sizes = [16, 128], strides = [1, 1]} : vector<16x768xf32> to vector<16x128xf32>
    %19 = arith.truncf %18 : vector<16x128xf32> to vector<16x128xbf16>
    %cst_12 = arith.constant dense<0.000000e+00> : vector<16x16xf32>
    %20 = tpu.matmul %15, %17, %cst_12 {dimension_numbers = #tpu.dot_dimension_numbers<[1], [1], [0], [0], [0, 0, 1, 0], [], []>} : vector<16x128xbf16>, vector<16x128xbf16>, vector<16x16xf32> -> vector<16x16xf32>
    %21 = arith.addf %20, %13 : vector<16x16xf32>
    %cst_13 = arith.constant dense<0xFF800000> : vector<16xf32>
    %22 = vector.multi_reduction <maximumf>, %21, %cst_13 [1] : vector<16x16xf32> to vector<16xf32>
    %23 = vector.shape_cast %22 : vector<16xf32> to vector<16x1xf32>
    %24 = vector.broadcast %23 : vector<16x1xf32> to vector<16x16xf32>
    %25 = arith.subf %21, %24 : vector<16x16xf32>
    %26 = math.exp %25 : vector<16x16xf32>
    %cst_14 = arith.constant dense<0.000000e+00> : vector<16xf32>
    %27 = vector.multi_reduction <add>, %26, %cst_14 [1] : vector<16x16xf32> to vector<16xf32>
    %28 = vector.shape_cast %27 : vector<16xf32> to vector<16x1xf32>
    %29 = vector.broadcast %28 : vector<16x1xf32> to vector<16x16xf32>
    %30 = arith.divf %26, %29 : vector<16x16xf32>
    %31 = arith.truncf %30 : vector<16x16xf32> to vector<16x16xbf16>
    %cst_15 = arith.constant dense<0.000000e+00> : vector<16x128xf32>
    %32 = tpu.matmul %31, %19, %cst_15 {dimension_numbers = #tpu.dot_dimension_numbers<[1], [0], [0], [1], [0, 0, 1, 1], [], []>} : vector<16x16xbf16>, vector<16x128xbf16>, vector<16x128xf32> -> vector<16x128xf32>
    %33 = arith.truncf %32 : vector<16x128xf32> to vector<16x128xbf16>
    %c0_16 = arith.constant 0 : index
    %c0_17 = arith.constant 0 : index
    %34 = vector.load %arg18[%c0_16, %c0_17] : memref<16x256xbf16, #tpu.memory_space<vmem>>, vector<16x128xbf16>
    tpu.vector_store %arg18[%c0_16, %c0_17], %33 {strides = array<i32>} : memref<16x256xbf16, #tpu.memory_space<vmem>>, vector<16x128xbf16>,
    %35 = vector.extract_strided_slice %12 {offsets = [0, 128], sizes = [16, 128], strides = [1, 1]} : vector<16x768xf32> to vector<16x128xf32>
    %36 = arith.truncf %35 : vector<16x128xf32> to vector<16x128xbf16>
    %37 = vector.extract_strided_slice %12 {offsets = [0, 384], sizes = [16, 128], strides = [1, 1]} : vector<16x768xf32> to vector<16x128xf32>
    %38 = arith.truncf %37 : vector<16x128xf32> to vector<16x128xbf16>
    %39 = vector.extract_strided_slice %12 {offsets = [0, 640], sizes = [16, 128], strides = [1, 1]} : vector<16x768xf32> to vector<16x128xf32>
    %40 = arith.truncf %39 : vector<16x128xf32> to vector<16x128xbf16>
    %cst_18 = arith.constant dense<0.000000e+00> : vector<16x16xf32>
    %41 = tpu.matmul %36, %38, %cst_18 {dimension_numbers = #tpu.dot_dimension_numbers<[1], [1], [0], [0], [0, 0, 1, 0], [], []>} : vector<16x128xbf16>, vector<16x128xbf16>, vector<16x16xf32> -> vector<16x16xf32>
    %42 = arith.addf %41, %13 : vector<16x16xf32>
    %cst_19 = arith.constant dense<0xFF800000> : vector<16xf32>
    %43 = vector.multi_reduction <maximumf>, %42, %cst_19 [1] : vector<16x16xf32> to vector<16xf32>
    %44 = vector.shape_cast %43 : vector<16xf32> to vector<16x1xf32>
    %45 = vector.broadcast %44 : vector<16x1xf32> to vector<16x16xf32>
    %46 = arith.subf %42, %45 : vector<16x16xf32>
    %47 = math.exp %46 : vector<16x16xf32>
    %cst_20 = arith.constant dense<0.000000e+00> : vector<16xf32>
    %48 = vector.multi_reduction <add>, %47, %cst_20 [1] : vector<16x16xf32> to vector<16xf32>
    %49 = vector.shape_cast %48 : vector<16xf32> to vector<16x1xf32>
    %50 = vector.broadcast %49 : vector<16x1xf32> to vector<16x16xf32>
    %51 = arith.divf %47, %50 : vector<16x16xf32>
    %52 = arith.truncf %51 : vector<16x16xf32> to vector<16x16xbf16>
    %cst_21 = arith.constant dense<0.000000e+00> : vector<16x128xf32>
    %53 = tpu.matmul %52, %40, %cst_21 {dimension_numbers = #tpu.dot_dimension_numbers<[1], [0], [0], [1], [0, 0, 1, 1], [], []>} : vector<16x16xbf16>, vector<16x128xbf16>, vector<16x128xf32> -> vector<16x128xf32>
    %54 = arith.truncf %53 : vector<16x128xf32> to vector<16x128xbf16>
    %c0_22 = arith.constant 0 : index
    %c128 = arith.constant 128 : index
    %55 = vector.load %arg18[%c0_22, %c128] : memref<16x256xbf16, #tpu.memory_space<vmem>>, vector<16x128xbf16>
    tpu.vector_store %arg18[%c0_22, %c128], %54 {strides = array<i32>} : memref<16x256xbf16, #tpu.memory_space<vmem>>, vector<16x128xbf16>,
    %c0_23 = arith.constant 0 : index
    %c0_24 = arith.constant 0 : index
    %56 = vector.load %arg18[%c0_23, %c0_24] : memref<16x256xbf16, #tpu.memory_space<vmem>>, vector<16x256xbf16>
    %c0_25 = arith.constant 0 : index
    %c0_26 = arith.constant 0 : index
    %57 = vector.load %arg7[%c0_25, %c0_26] : memref<256x256xbf16, #tpu.memory_space<vmem>>, vector<256x256xbf16>
    %cst_27 = arith.constant dense<0.000000e+00> : vector<16x256xf32>
    %58 = tpu.matmul %56, %57, %cst_27 {dimension_numbers = #tpu.dot_dimension_numbers<[1], [0], [0], [1], [0, 0, 1, 1], [], []>} : vector<16x256xbf16>, vector<256x256xbf16>, vector<16x256xf32> -> vector<16x256xf32>
    %c0_28 = arith.constant 0 : index
    %c0_29 = arith.constant 0 : index
    %59 = vector.load %arg8[%c0_28, %c0_29] : memref<1x256xf32, #tpu.memory_space<vmem>>, vector<1x256xf32>
    %60 = vector.broadcast %59 : vector<1x256xf32> to vector<16x256xf32>
    %61 = arith.addf %58, %60 : vector<16x256xf32>
    %cst_30 = arith.constant dense<0.000000e+00> : vector<256xf32>
    %62 = vector.multi_reduction <add>, %61, %cst_30 [0] : vector<16x256xf32> to vector<256xf32>
    %63 = vector.shape_cast %62 : vector<256xf32> to vector<1x256xf32>
    %cst_31 = arith.constant 1.600000e+01 : f32
    %64 = vector.broadcast %cst_31 : f32 to vector<1x256xf32>
    %65 = arith.divf %63, %64 : vector<1x256xf32>
    %66 = vector.broadcast %65 : vector<1x256xf32> to vector<16x256xf32>
    %67 = arith.subf %61, %66 : vector<16x256xf32>
    %68 = arith.mulf %67, %67 : vector<16x256xf32>
    %cst_32 = arith.constant dense<0.000000e+00> : vector<256xf32>
    %69 = vector.multi_reduction <add>, %68, %cst_32 [0] : vector<16x256xf32> to vector<256xf32>
    %70 = vector.shape_cast %69 : vector<256xf32> to vector<1x256xf32>
    %cst_33 = arith.constant 1.600000e+01 : f32
    %71 = vector.broadcast %cst_33 : f32 to vector<1x256xf32>
    %72 = arith.divf %70, %71 : vector<1x256xf32>
    %cst_34 = arith.constant 9.99999974E-6 : f32
    %73 = vector.broadcast %cst_34 : f32 to vector<1x256xf32>
    %74 = arith.addf %72, %73 : vector<1x256xf32>
    %75 = math.rsqrt %74 : vector<1x256xf32>
    %76 = vector.broadcast %75 : vector<1x256xf32> to vector<16x256xf32>
    %77 = arith.mulf %67, %76 : vector<16x256xf32>
    %c0_35 = arith.constant 0 : index
    %c0_36 = arith.constant 0 : index
    %78 = vector.load %arg9[%c0_35, %c0_36] : memref<1x256xf32, #tpu.memory_space<vmem>>, vector<1x256xf32>
    %79 = vector.broadcast %78 : vector<1x256xf32> to vector<16x256xf32>
    %80 = arith.mulf %77, %79 : vector<16x256xf32>
    %c0_37 = arith.constant 0 : index
    %c0_38 = arith.constant 0 : index
    %81 = vector.load %arg10[%c0_37, %c0_38] : memref<1x256xf32, #tpu.memory_space<vmem>>, vector<1x256xf32>
    %82 = vector.broadcast %81 : vector<1x256xf32> to vector<16x256xf32>
    %83 = arith.addf %80, %82 : vector<16x256xf32>
    %84 = arith.addf %6, %83 : vector<16x256xf32>
    %85 = arith.truncf %84 : vector<16x256xf32> to vector<16x256xbf16>
    %c0_39 = arith.constant 0 : index
    %c0_40 = arith.constant 0 : index
    %86 = vector.load %arg11[%c0_39, %c0_40] : memref<256x256xbf16, #tpu.memory_space<vmem>>, vector<256x256xbf16>
    %cst_41 = arith.constant dense<0.000000e+00> : vector<16x256xf32>
    %87 = tpu.matmul %85, %86, %cst_41 {dimension_numbers = #tpu.dot_dimension_numbers<[1], [0], [0], [1], [0, 0, 1, 1], [], []>} : vector<16x256xbf16>, vector<256x256xbf16>, vector<16x256xf32> -> vector<16x256xf32>
    %c0_42 = arith.constant 0 : index
    %c0_43 = arith.constant 0 : index
    %88 = vector.load %arg12[%c0_42, %c0_43] : memref<1x256xf32, #tpu.memory_space<vmem>>, vector<1x256xf32>
    %89 = vector.broadcast %88 : vector<1x256xf32> to vector<16x256xf32>
    %90 = arith.addf %87, %89 : vector<16x256xf32>
    %cst_44 = arith.constant 0.000000e+00 : f32
    %91 = vector.broadcast %cst_44 : f32 to vector<16x256xf32>
    %92 = arith.maximumf %90, %91 : vector<16x256xf32>
    %93 = arith.truncf %92 : vector<16x256xf32> to vector<16x256xbf16>
    %c0_45 = arith.constant 0 : index
    %c0_46 = arith.constant 0 : index
    %94 = vector.load %arg13[%c0_45, %c0_46] : memref<256x256xbf16, #tpu.memory_space<vmem>>, vector<256x256xbf16>
    %cst_47 = arith.constant dense<0.000000e+00> : vector<16x256xf32>
    %95 = tpu.matmul %93, %94, %cst_47 {dimension_numbers = #tpu.dot_dimension_numbers<[1], [0], [0], [1], [0, 0, 1, 1], [], []>} : vector<16x256xbf16>, vector<256x256xbf16>, vector<16x256xf32> -> vector<16x256xf32>
    %c0_48 = arith.constant 0 : index
    %c0_49 = arith.constant 0 : index
    %96 = vector.load %arg14[%c0_48, %c0_49] : memref<1x256xf32, #tpu.memory_space<vmem>>, vector<1x256xf32>
    %97 = vector.broadcast %96 : vector<1x256xf32> to vector<16x256xf32>
    %98 = arith.addf %95, %97 : vector<16x256xf32>
    %cst_50 = arith.constant dense<0.000000e+00> : vector<256xf32>
    %99 = vector.multi_reduction <add>, %98, %cst_50 [0] : vector<16x256xf32> to vector<256xf32>
    %100 = vector.shape_cast %99 : vector<256xf32> to vector<1x256xf32>
    %cst_51 = arith.constant 1.600000e+01 : f32
    %101 = vector.broadcast %cst_51 : f32 to vector<1x256xf32>
    %102 = arith.divf %100, %101 : vector<1x256xf32>
    %103 = vector.broadcast %102 : vector<1x256xf32> to vector<16x256xf32>
    %104 = arith.subf %98, %103 : vector<16x256xf32>
    %105 = arith.mulf %104, %104 : vector<16x256xf32>
    %cst_52 = arith.constant dense<0.000000e+00> : vector<256xf32>
    %106 = vector.multi_reduction <add>, %105, %cst_52 [0] : vector<16x256xf32> to vector<256xf32>
    %107 = vector.shape_cast %106 : vector<256xf32> to vector<1x256xf32>
    %cst_53 = arith.constant 1.600000e+01 : f32
    %108 = vector.broadcast %cst_53 : f32 to vector<1x256xf32>
    %109 = arith.divf %107, %108 : vector<1x256xf32>
    %cst_54 = arith.constant 9.99999974E-6 : f32
    %110 = vector.broadcast %cst_54 : f32 to vector<1x256xf32>
    %111 = arith.addf %109, %110 : vector<1x256xf32>
    %112 = math.rsqrt %111 : vector<1x256xf32>
    %113 = vector.broadcast %112 : vector<1x256xf32> to vector<16x256xf32>
    %114 = arith.mulf %104, %113 : vector<16x256xf32>
    %c0_55 = arith.constant 0 : index
    %c0_56 = arith.constant 0 : index
    %115 = vector.load %arg15[%c0_55, %c0_56] : memref<1x256xf32, #tpu.memory_space<vmem>>, vector<1x256xf32>
    %116 = vector.broadcast %115 : vector<1x256xf32> to vector<16x256xf32>
    %117 = arith.mulf %114, %116 : vector<16x256xf32>
    %c0_57 = arith.constant 0 : index
    %c0_58 = arith.constant 0 : index
    %118 = vector.load %arg16[%c0_57, %c0_58] : memref<1x256xf32, #tpu.memory_space<vmem>>, vector<1x256xf32>
    %119 = vector.broadcast %118 : vector<1x256xf32> to vector<16x256xf32>
    %120 = arith.addf %117, %119 : vector<16x256xf32>
    %121 = arith.addf %84, %120 : vector<16x256xf32>
    %122 = vector.shape_cast %121 : vector<16x256xf32> to vector<2x8x256xf32>
    %cst_59 = arith.constant dense<0.000000e+00> : vector<2x256xf32>
    %123 = vector.multi_reduction <add>, %122, %cst_59 [1] : vector<2x8x256xf32> to vector<2x256xf32>
    %cst_60 = arith.constant 8.000000e+00 : f32
    %124 = vector.broadcast %cst_60 : f32 to vector<2x256xf32>
    %125 = arith.divf %123, %124 : vector<2x256xf32>
    %126 = arith.mulf %125, %125 : vector<2x256xf32>
    %cst_61 = arith.constant dense<0.000000e+00> : vector<2xf32>
    %127 = vector.multi_reduction <add>, %126, %cst_61 [1] : vector<2x256xf32> to vector<2xf32>
    %128 = vector.shape_cast %127 : vector<2xf32> to vector<2x1xf32>
    %cst_62 = arith.constant 1.000000e-24 : f32
    %129 = vector.broadcast %cst_62 : f32 to vector<2x1xf32>
    %130 = arith.maximumf %128, %129 : vector<2x1xf32>
    %131 = math.rsqrt %130 : vector<2x1xf32>
    %132 = vector.broadcast %131 : vector<2x1xf32> to vector<2x256xf32>
    %133 = arith.mulf %125, %132 : vector<2x256xf32>
    %c0_63 = arith.constant 0 : index
    %c0_64 = arith.constant 0 : index
    %134 = vector.load %arg17[%c0_63, %c0_64] : memref<2x256xf32, #tpu.memory_space<vmem>>, vector<2x256xf32>
    tpu.vector_store %arg17[%c0_63, %c0_64], %133 {strides = array<i32>} : memref<2x256xf32, #tpu.memory_space<vmem>>, vector<2x256xf32>,
    return
  }
  func.func @transform_0(%arg0: i32) -> (i32, i32) {
    %c0_i32 = arith.constant 0 : i32
    %c0_i32_0 = arith.constant 0 : i32
    %c0_i32_1 = arith.constant 0 : i32
    return %c0_i32, %c0_i32_0 : i32, i32
  }
  func.func @transform_1(%arg0: i32) -> (i32, i32) {
    %c0_i32 = arith.constant 0 : i32
    %c0_i32_0 = arith.constant 0 : i32
    %c0_i32_1 = arith.constant 0 : i32
    return %c0_i32, %c0_i32_0 : i32, i32
  }
  func.func @transform_2(%arg0: i32) -> (i32, i32) {
    %c0_i32 = arith.constant 0 : i32
    %c0_i32_0 = arith.constant 0 : i32
    %c0_i32_1 = arith.constant 0 : i32
    return %c0_i32, %c0_i32_0 : i32, i32
  }
  func.func @transform_3(%arg0: i32) -> (i32, i32) {
    %c0_i32 = arith.constant 0 : i32
    %c0_i32_0 = arith.constant 0 : i32
    %c0_i32_1 = arith.constant 0 : i32
    return %c0_i32, %c0_i32_0 : i32, i32
  }
  func.func @transform_4(%arg0: i32) -> (i32, i32) {
    %c0_i32 = arith.constant 0 : i32
    %c0_i32_0 = arith.constant 0 : i32
    %c0_i32_1 = arith.constant 0 : i32
    return %c0_i32, %c0_i32_0 : i32, i32
  }
  func.func @transform_5(%arg0: i32) -> (i32, i32) {
    %c0_i32 = arith.constant 0 : i32
    %c0_i32_0 = arith.constant 0 : i32
    %c0_i32_1 = arith.constant 0 : i32
    return %c0_i32, %c0_i32_0 : i32, i32
  }
  func.func @transform_6(%arg0: i32) -> (i32, i32) {
    %c0_i32 = arith.constant 0 : i32
    %c0_i32_0 = arith.constant 0 : i32
    %c0_i32_1 = arith.constant 0 : i32
    return %c0_i32, %c0_i32_0 : i32, i32
  }
  func.func @transform_7(%arg0: i32) -> (i32, i32) {
    %c0_i32 = arith.constant 0 : i32
    %c0_i32_0 = arith.constant 0 : i32
    %c0_i32_1 = arith.constant 0 : i32
    return %c0_i32, %c0_i32_0 : i32, i32
  }
  func.func @transform_8(%arg0: i32) -> (i32, i32) {
    %c0_i32 = arith.constant 0 : i32
    %c0_i32_0 = arith.constant 0 : i32
    %c0_i32_1 = arith.constant 0 : i32
    return %c0_i32, %c0_i32_0 : i32, i32
  }
  func.func @transform_9(%arg0: i32) -> (i32, i32) {
    %c0_i32 = arith.constant 0 : i32
    %c0_i32_0 = arith.constant 0 : i32
    %c0_i32_1 = arith.constant 0 : i32
    return %c0_i32, %c0_i32_0 : i32, i32
  }
  func.func @transform_10(%arg0: i32) -> (i32, i32) {
    %c0_i32 = arith.constant 0 : i32
    %c0_i32_0 = arith.constant 0 : i32
    %c0_i32_1 = arith.constant 0 : i32
    return %c0_i32, %c0_i32_0 : i32, i32
  }
  func.func @transform_11(%arg0: i32) -> (i32, i32) {
    %c0_i32 = arith.constant 0 : i32
    %c0_i32_0 = arith.constant 0 : i32
    %c0_i32_1 = arith.constant 0 : i32
    return %c0_i32, %c0_i32_0 : i32, i32
  }
  func.func @transform_12(%arg0: i32) -> (i32, i32) {
    %c0_i32 = arith.constant 0 : i32
    %c0_i32_0 = arith.constant 0 : i32
    %c0_i32_1 = arith.constant 0 : i32
    return %c0_i32, %c0_i32_0 : i32, i32
  }
  func.func @transform_13(%arg0: i32) -> (i32, i32) {
    %c0_i32 = arith.constant 0 : i32
    %c0_i32_0 = arith.constant 0 : i32
    %c0_i32_1 = arith.constant 0 : i32
    return %c0_i32, %c0_i32_0 : i32, i32
  }
  func.func @transform_14(%arg0: i32) -> (i32, i32) {
    %c0_i32 = arith.constant 0 : i32
    %c0_i32_0 = arith.constant 0 : i32
    %c0_i32_1 = arith.constant 0 : i32
    return %c0_i32, %c0_i32_0 : i32, i32
  }
  func.func @transform_15(%arg0: i32) -> (i32, i32) {
    %c0_i32 = arith.constant 0 : i32
    %c0_i32_0 = arith.constant 0 : i32
    %c0_i32_1 = arith.constant 0 : i32
    return %c0_i32, %c0_i32_0 : i32, i32
  }
  func.func @transform_16(%arg0: i32) -> (i32, i32) {
    %c0_i32 = arith.constant 0 : i32
    %c0_i32_0 = arith.constant 0 : i32
    %c0_i32_1 = arith.constant 0 : i32
    return %c0_i32, %c0_i32_0 : i32, i32
  }
}

</mosaic_0001>

<bundles_post_ra>
// kernel: text_encoder_forward.1
= control target key start
LH: loop header
LB: loop body
LE: loop exit
PB: predicated region body
PF: predicated region fallthrough
CT: control target
= control target key end

     0   :  { %s3550_s0 = inlined_call_operand.hbm [shape: f32[16,128], index: 0, kind: input, shape index: {}]   ;;  %s3551_s1 = inlined_call_operand.hbm [shape: f32[16,16], index: 1, kind: input, shape index: {}]   ;;  %s3552_s2 = inlined_call_operand.hbm [shape: bf16[128,256], index: 2, kind: input, shape index: {}]   ;;  %s3553_s3 = inlined_call_operand.vmem [shape: f32[1,256], index: 3, kind: input, shape index: {}]   ;;  %s3554_s4 = inlined_call_operand.hbm [shape: bf16[256,768], index: 4, kind: input, shape index: {}]   ;;  %s3555_s5 = inlined_call_operand.vmem [shape: f32[1,768], index: 5, kind: input, shape index: {}]   ;;  %s3556_s6 = inlined_call_operand.hbm [shape: bf16[256,256], index: 6, kind: input, shape index: {}]   ;;  %s3557_s7 = inlined_call_operand.vmem [shape: f32[1,256], index: 7, kind: input, shape index: {}]   ;;  %s3558_s8 = inlined_call_operand.vmem [shape: f32[1,256], index: 8, kind: input, shape index: {}]   ;;  %s3559_s9 = inlined_call_operand.vmem [shape: f32[1,256], index: 9, kind: input, shape index: {}]   ;;  %s3560_s10 = inlined_call_operand.hbm [shape: bf16[256,256], index: 10, kind: input, shape index: {}]   ;;  %s3561_s11 = inlined_call_operand.hbm [shape: f32[1,256], index: 11, kind: input, shape index: {}]   ;;  %s3562_s12 = inlined_call_operand.hbm [shape: bf16[256,256], index: 12, kind: input, shape index: {}]   ;;  %s3563_s13 = inlined_call_operand.hbm [shape: f32[1,256], index: 13, kind: input, shape index: {}]   ;;  %s3564_s14 = inlined_call_operand.vmem [shape: f32[1,256], index: 14, kind: input, shape index: {}]   ;;  %s3565_s15 = inlined_call_operand.vmem [shape: f32[1,256], index: 15, kind: input, shape index: {}]   ;;  %s3566_s16 = inlined_call_operand.hbm [shape: f32[2,256], index: 16, kind: output, shape index: {}]  }
   0x1   :  { %3572 = sst [smem:[#allocation25_spill]] %s3550_s0 }
   0x2   :  { %21 = vsyncpa [#allocation4], 0 }
   0x3   :  { %22 = vsyncpa [#allocation7], 0 }
   0x4   :  { %23 = vsyncpa [#allocation10], 0 }
   0x5   :  { %24 = vsyncpa [#allocation13], 0 }
   0x6   :  { %25 = vsyncpa [#allocation16], 0 }
   0x7   :  { %26 = vsyncpa [#allocation5], 0  ;;  %s3156_s21 = smov [#allocation6]   ;;  %s3157_s23 = smov [#allocation9]  }
   0x8   :  { %s44_s22 = sshll.u32 %s3156_s21, 4  ;;  %s70_s24 = sshll.u32 %s3157_s23, 4  ;;  %s45_s22 = int_to_ptr.vmem [resolvable:$true] %s44_s22  ;;  %s3259_s24 = int_to_ptr.vmem [resolvable:$true] %s70_s24 }
   0x9   :  { %s2924_s27 = scalar_lea.hbm %s3551_s1, 256 }
   0xa   :  { %p2925_p0 = scmp.ne.s32.totalorder %s3551_s1, %s2924_s27  ;;  %p2928_p1 = scmp.lt.u32.totalorder %s2924_s27, %s3551_s1 }
   0xc   :  { %p2930_p2 = pnand %p2928_p1, %p2925_p0 }
   0xe   :  { %2933 = shalt.err (!%p2930_p2)
}
   0xf   :  { %s2934_s17 = scalar_lea.vmem %s45_s22, 256  ;;  %p2939_p4 = scmp.lt.s32.totalorder %s45_s22, %s45_s22 }
  0x10   :  { %p2935_p3 = scmp.ne.s32.totalorder %s45_s22, %s2934_s17  ;;  %p2940_p5 = scmp.lt.s32.totalorder %s2934_s17, %s2934_s17 }
  0x12   :  { %p2941_p6 = por %p2940_p5, %p2939_p4 }
  0x14   :  { %p2942_p7 = pnand %p2941_p6, %p2935_p3 }
  0x16   :  { %2945 = shalt.err (!%p2942_p7)
}
  0x17   :  { %s3568_s18 = smov 128   ;;  %s3570_s19 = smov 8  }
  0x18   :  { %50 = dma.hbm_to_vmem [thread:$0]  %s3551_s1, 256, %s45_s22, [#allocation7], %s3568_s18, %s3568_s18, %s3570_s19  }
  0x19   :  { %s2946_s26 = scalar_lea.hbm %s3554_s4, 12288 }
  0x1a   :  { %p2947_p8 = scmp.ne.s32.totalorder %s3554_s4, %s2946_s26  ;;  %p2950_p9 = scmp.lt.u32.totalorder %s2946_s26, %s3554_s4 }
  0x1c   :  { %p2952_p10 = pnand %p2950_p9, %p2947_p8 }
  0x1e   :  { %2955 = shalt.err (!%p2952_p10)
}
  0x1f   :  { %s2956_s0 = scalar_lea.vmem %s3259_s24, 12288  ;;  %p2961_p12 = scmp.lt.s32.totalorder %s3259_s24, %s3259_s24 }
  0x20   :  { %p2957_p11 = scmp.ne.s32.totalorder %s3259_s24, %s2956_s0  ;;  %p2962_p13 = scmp.lt.s32.totalorder %s2956_s0, %s2956_s0 }
  0x22   :  { %p2963_p0 = por %p2962_p13, %p2961_p12 }
  0x24   :  { %p2964_p1 = pnand %p2963_p0, %p2957_p11 }
  0x26   :  { %2967 = shalt.err (!%p2964_p1)
}
  0x27   :  { %s3160_s1 = smov 384   ;;  %s3161_s22 = smov 24  }
  0x28   :  { %76 = dma.hbm_to_vmem [thread:$0]  %s3554_s4, 12288, %s3259_s24, [#allocation10], %s3160_s1, %s3160_s1, %s3161_s22  }
  0x29   :  { %s3162_s21 = smov [#allocation12]   ;;  %s3163_s25 = smov [#allocation15]  }
  0x2a   :  { %s102_s23 = sshll.u32 %s3162_s21, 4  ;;  %s124_s26 = sshll.u32 %s3163_s25, 4  ;;  %s103_s23 = int_to_ptr.vmem [resolvable:$true] %s102_s23  ;;  %s3293_s26 = int_to_ptr.vmem [resolvable:$true] %s124_s26 }
  0x2b   :  { %s2968_s29 = scalar_lea.hbm %s3560_s10, 4096 }
  0x2c   :  { %p2969_p2 = scmp.ne.s32.totalorder %s3560_s10, %s2968_s29  ;;  %p2972_p3 = scmp.lt.u32.totalorder %s2968_s29, %s3560_s10 }
  0x2e   :  { %p2974_p4 = pnand %p2972_p3, %p2969_p2 }
  0x30   :  { %2977 = shalt.err (!%p2974_p4)
}
  0x31   :  { %s2978_s4 = scalar_lea.vmem %s103_s23, 4096  ;;  %p2983_p6 = scmp.lt.s32.totalorder %s103_s23, %s103_s23 }
  0x32   :  { %p2979_p5 = scmp.ne.s32.totalorder %s103_s23, %s2978_s4  ;;  %p2984_p7 = scmp.lt.s32.totalorder %s2978_s4, %s2978_s4 }
  0x34   :  { %p2985_p8 = por %p2984_p7, %p2983_p6 }
  0x36   :  { %p2986_p9 = pnand %p2985_p8, %p2979_p5 }
  0x38   :  { %2989 = shalt.err (!%p2986_p9)
}
  0x39   :  { %s3573_s24 = smov 8   ;;  %s3574_s1 = smov 128  }
  0x3a   :  { %108 = dma.hbm_to_vmem [thread:$0]  %s3560_s10, 4096, %s103_s23, [#allocation13], %s3574_s1, %s3574_s1, %s3573_s24  }
  0x3b   :  { %s2990_s18 = scalar_lea.hbm %s3562_s12, 4096 }
  0x3c   :  { %p2991_p10 = scmp.ne.s32.totalorder %s3562_s12, %s2990_s18  ;;  %p2994_p11 = scmp.lt.u32.totalorder %s2990_s18, %s3562_s12 }
  0x3e   :  { %p2996_p12 = pnand %p2994_p11, %p2991_p10 }
  0x40   :  { %2999 = shalt.err (!%p2996_p12)
}
  0x41   :  { %s3000_s29 = scalar_lea.vmem %s3293_s26, 4096  ;;  %p3005_p0 = scmp.lt.s32.totalorder %s3293_s26, %s3293_s26 }
  0x42   :  { %p3001_p13 = scmp.ne.s32.totalorder %s3293_s26, %s3000_s29  ;;  %p3006_p1 = scmp.lt.s32.totalorder %s3000_s29, %s3000_s29 }
  0x44   :  { %p3007_p2 = por %p3006_p1, %p3005_p0 }
  0x46   :  { %p3008_p3 = pnand %p3007_p2, %p3001_p13 }
  0x48   :  { %3011 = shalt.err (!%p3008_p3)
}
  0x49   :  { %130 = dma.hbm_to_vmem [thread:$0]  %s3562_s12, 4096, %s3293_s26, [#allocation16], %s3574_s1, %s3574_s1, %s3573_s24  }
  0x4a   :  { %s3164_s30 = smov [#allocation3]   ;;  %s3165_s4 = smov [#allocation8]  }
  0x4b   :  { %s32_s0 = sshll.u32 %s3164_s30, 4  ;;  %s56_s22 = sshll.u32 %s3165_s4, 4  ;;  %s33_s0 = int_to_ptr.vmem [resolvable:$true] %s32_s0  ;;  %s3330_s22 = int_to_ptr.vmem [resolvable:$true] %s56_s22 }
  0x4c   :  { %s3575_s21 = sld [smem:[#allocation25_spill]] }
  0x52   :  { %s3012_s18 = scalar_lea.hbm %s3575_s21, 256 }
  0x53   :  { %p3013_p4 = scmp.ne.s32.totalorder %s3575_s21, %s3012_s18  ;;  %p3016_p5 = scmp.lt.u32.totalorder %s3012_s18, %s3575_s21 }
  0x55   :  { %p3018_p6 = pnand %p3016_p5, %p3013_p4 }
  0x57   :  { %3021 = shalt.err (!%p3018_p6)
}
  0x58   :  { %s3022_s12 = scalar_lea.vmem %s33_s0, 256  ;;  %p3027_p8 = scmp.lt.s32.totalorder %s33_s0, %s33_s0 }
  0x59   :  { %p3023_p7 = scmp.ne.s32.totalorder %s33_s0, %s3022_s12  ;;  %p3028_p9 = scmp.lt.s32.totalorder %s3022_s12, %s3022_s12 }
  0x5b   :  { %p3029_p10 = por %p3028_p9, %p3027_p8 }
  0x5d   :  { %p3030_p11 = pnand %p3029_p10, %p3023_p7 }
  0x5f   :  { %3033 = shalt.err (!%p3030_p11)
}
  0x60   :  { %38 = dma.hbm_to_vmem [thread:$0]  %s3575_s21, 256, %s33_s0, [#allocation4], %s3574_s1, %s3574_s1, %s3573_s24  }
  0x61   :  { %s3034_s30 = scalar_lea.hbm %s3552_s2, 2048 }
  0x62   :  { %p3035_p12 = scmp.ne.s32.totalorder %s3552_s2, %s3034_s30  ;;  %p3038_p13 = scmp.lt.u32.totalorder %s3034_s30, %s3552_s2 }
  0x64   :  { %p3040_p0 = pnand %p3038_p13, %p3035_p12 }
  0x66   :  { %3043 = shalt.err (!%p3040_p0)
}
  0x67   :  { %s3044_s19 = scalar_lea.vmem %s3330_s22, 2048  ;;  %p3049_p2 = scmp.lt.s32.totalorder %s3330_s22, %s3330_s22 }
  0x68   :  { %p3045_p1 = scmp.ne.s32.totalorder %s3330_s22, %s3044_s19  ;;  %p3050_p3 = scmp.lt.s32.totalorder %s3044_s19, %s3044_s19 }
  0x6a   :  { %p3051_p4 = por %p3050_p3, %p3049_p2 }
  0x6c   :  { %p3052_p5 = pnand %p3051_p4, %p3045_p1 }
  0x6e   :  { %3055 = shalt.err (!%p3052_p5)
}
  0x6f   :  { %62 = dma.hbm_to_vmem [thread:$0]  %s3552_s2, 2048, %s3330_s22, [#allocation7], %s3574_s1, %s3574_s1, %s3573_s24  }
  0x70   :  { %s3166_s25 = smov [#allocation11]   ;;  %s3167_s28 = smov [#allocation14]  }
  0x71   :  { %s84_s27 = sshll.u32 %s3166_s25, 4  ;;  %s115_s12 = sshll.u32 %s3167_s28, 4  ;;  %s85_s27 = int_to_ptr.vmem [resolvable:$true] %s84_s27  ;;  %s116_s12 = int_to_ptr.vmem [resolvable:$true] %s115_s12 }
  0x72   :  { %s3056_s10 = scalar_lea.hbm %s3556_s6, 4096 }
  0x73   :  { %p3057_p6 = scmp.ne.s32.totalorder %s3556_s6, %s3056_s10  ;;  %p3060_p7 = scmp.lt.u32.totalorder %s3056_s10, %s3556_s6 }
  0x75   :  { %p3062_p8 = pnand %p3060_p7, %p3057_p6 }
  0x77   :  { %3065 = shalt.err (!%p3062_p8)
}
  0x78   :  { %s3066_s2 = scalar_lea.vmem %s85_s27, 4096  ;;  %p3071_p10 = scmp.lt.s32.totalorder %s85_s27, %s85_s27 }
  0x79   :  { %p3067_p9 = scmp.ne.s32.totalorder %s85_s27, %s3066_s2  ;;  %p3072_p11 = scmp.lt.s32.totalorder %s3066_s2, %s3066_s2 }
  0x7b   :  { %p3073_p12 = por %p3072_p11, %p3071_p10 }
  0x7d   :  { %p3074_p13 = pnand %p3073_p12, %p3067_p9 }
  0x7f   :  { %3077 = shalt.err (!%p3074_p13)
}
  0x80   :  { %90 = dma.hbm_to_vmem [thread:$0]  %s3556_s6, 4096, %s85_s27, [#allocation10], %s3574_s1, %s3574_s1, %s3573_s24  }
  0x81   :  { %s3078_s0 = scalar_lea.hbm %s3561_s11, 32 }
  0x82   :  { %p3079_p0 = scmp.ne.s32.totalorder %s3561_s11, %s3078_s0  ;;  %p3082_p1 = scmp.lt.u32.totalorder %s3078_s0, %s3561_s11 }
  0x84   :  { %p3084_p2 = pnand %p3082_p1, %p3079_p0 }
  0x86   :  { %3087 = shalt.err (!%p3084_p2)
}
  0x87   :  { %s3088_s29 = scalar_lea.vmem %s116_s12, 32  ;;  %p3093_p4 = scmp.lt.s32.totalorder %s116_s12, %s116_s12 }
  0x88   :  { %p3089_p3 = scmp.ne.s32.totalorder %s116_s12, %s3088_s29  ;;  %p3094_p5 = scmp.lt.s32.totalorder %s3088_s29, %s3088_s29 }
  0x8a   :  { %p3095_p6 = por %p3094_p5, %p3093_p4 }
  0x8c   :  { %p3096_p7 = pnand %p3095_p6, %p3089_p3 }
  0x8e   :  { %3099 = shalt.err (!%p3096_p7)
}
  0x8f   :  { %118 = dma.hbm_to_vmem [thread:$0]  %s3561_s11, 32, %s116_s12, [#allocation13]  }
  0x90   :  { %s3168_s1 = smov [#allocation17]   ;;  %s3100_s30 = scalar_lea.hbm %s3563_s13, 32 }
  0x91   :  { %s137_s27 = sshll.u32 %s3168_s1, 4  ;;  %p3101_p8 = scmp.ne.s32.totalorder %s3563_s13, %s3100_s30  ;;  %s138_s27 = int_to_ptr.vmem [resolvable:$true] %s137_s27 }
  0x92   :  { %p3104_p9 = scmp.lt.u32.totalorder %s3100_s30, %s3563_s13 }
  0x94   :  { %p3106_p10 = pnand %p3104_p9, %p3101_p8 }
  0x96   :  { %3109 = shalt.err (!%p3106_p10)
}
  0x97   :  { %s3110_s20 = scalar_lea.vmem %s138_s27, 32  ;;  %p3115_p12 = scmp.lt.s32.totalorder %s138_s27, %s138_s27 }
  0x98   :  { %p3111_p11 = scmp.ne.s32.totalorder %s138_s27, %s3110_s20  ;;  %p3116_p13 = scmp.lt.s32.totalorder %s3110_s20, %s3110_s20 }
  0x9a   :  { %p3117_p0 = por %p3116_p13, %p3115_p12 }
  0x9c   :  { %p3118_p1 = pnand %p3117_p0, %p3111_p11 }
  0x9e   :  { %3121 = shalt.err (!%p3118_p1)
}
  0x9f   :  { %140 = dma.hbm_to_vmem [thread:$0]  %s3563_s13, 32, %s138_s27, [#allocation16]  }
  0xa0   :  { %3144 = dma.done.wait [#allocation4], 256  }
  0xa1   :  { %3145 = vsyncadd [#allocation4], 4294967040 }
  0xa2   :  { %3146 = dma.done.wait [#allocation7], 2304  }
  0xa3   :  { %3147 = vsyncadd [#allocation7], 4294964992 }
  0xa4   :  { %3148 = dma.done.wait [#allocation10], 16384  }
  0xa5   :  { %3149 = vsyncadd [#allocation10], 4294950912 }
  0xa6   :  { %3150 = dma.done.wait [#allocation13], 4128  }
  0xa7   :  { %3151 = vsyncadd [#allocation13], 4294963168 }
  0xa8   :  { %3152 = dma.done.wait [#allocation16], 4128  }
  0xa9   :  { %3153 = vsyncadd [#allocation16], 4294963168  ;;  %v3169_v0 = vmov 0   ;;  %v2586_v1 = vld [vmem:[#allocation8 + $0x4] ss:$8 sps:$4 sm:$0xff]   ;;  %vm3171_vm0 = vmmov 0  }
  0xaa   :  { %316 = vmatprep.mubr.bf16.mxu1 %v3169_v0  ;;  %v2588_v2 = vld [vmem:[#allocation8] ss:$8 sps:$4 sm:$0xff]   ;;  %284 = vmatprep.subr.bf16.mxu1 %v2586_v1  ;;  %v2589_v3 = vld [vmem:[#allocation8 + $0x14] ss:$8 sps:$4 sm:$0xff]   ;;  %v2591_v4 = vld [vmem:[#allocation8 + $0x10] ss:$8 sps:$4 sm:$0xff]  }
  0xab   :  { %285 = vmatpush1.bf16.msra.mxu1 %v2588_v2  ;;  %v2592_v5 = vld [vmem:[#allocation8 + $0x24] ss:$8 sps:$4 sm:$0xff]   ;;  %v2594_v6 = vld [vmem:[#allocation8 + $0x20] ss:$8 sps:$4 sm:$0xff]   ;;  %v2595_v7 = vld [vmem:[#allocation8 + $0x34] ss:$8 sps:$4 sm:$0xff]  }
  0xac   :  { %286 = vmatprep.subr.bf16.mxu1 %v2589_v3  ;;  %v2597_v8 = vld [vmem:[#allocation8 + $0x30] ss:$8 sps:$4 sm:$0xff]   ;;  %v2598_v9 = vld [vmem:[#allocation8 + $0x44] ss:$8 sps:$4 sm:$0xff]   ;;  %v2615_v11 = vld [vmem:[#allocation9 + $0x8] ss:$24 sps:$4 sm:$0xff]  }
  0xad   :  { %v2613_v10 = vld [vmem:[#allocation9 + $0xc] ss:$24 sps:$4 sm:$0xff]   ;;  %v2600_v12 = vld [vmem:[#allocation8 + $0x40] ss:$8 sps:$4 sm:$0xff]   ;;  %v2601_v13 = vld [vmem:[#allocation8 + $0x54] ss:$8 sps:$4 sm:$0xff]  }
  0xae   :  { %980 = vmatprep.subr.bf16.mxu0 %v2613_v10  ;;  %v2619_v14 = vld [vmem:[#allocation9 + $0x3c] ss:$24 sps:$4 sm:$0xff]   ;;  %v2621_v15 = vld [vmem:[#allocation9 + $0x38] ss:$24 sps:$4 sm:$0xff]   ;;  %v2625_v16 = vld [vmem:[#allocation9 + $0x6c] ss:$24 sps:$4 sm:$0xff]  }
  0xaf   :  { %287 = vmatpush1.bf16.msra.mxu1 %v2591_v4  ;;  %981 = vmatpush1.bf16.msra.mxu0 %v2615_v11  ;;  %v2603_v17 = vld [vmem:[#allocation8 + $0x50] ss:$8 sps:$4 sm:$0xff]   ;;  %v2604_v18 = vld [vmem:[#allocation8 + $0x64] ss:$8 sps:$4 sm:$0xff]   ;;  %v2627_v19 = vld [vmem:[#allocation9 + $0x68] ss:$24 sps:$4 sm:$0xff]  }
  0xb0   :  { %288 = vmatprep.subr.bf16.mxu1 %v2592_v5  ;;  %982 = vmatprep.subr.bf16.mxu0 %v2619_v14  ;;  %v2631_v20 = vld [vmem:[#allocation9 + $0x9c] ss:$24 sps:$4 sm:$0xff]   ;;  %v2606_v21 = vld [vmem:[#allocation8 + $0x60] ss:$8 sps:$4 sm:$0xff]   ;;  %v2633_v23 = vld [vmem:[#allocation9 + $0x98] ss:$24 sps:$4 sm:$0xff]  }
  0xb1   :  { %v2607_v22 = vld [vmem:[#allocation8 + $0x74] ss:$8 sps:$4 sm:$0xff]   ;;  %v2609_v24 = vld [vmem:[#allocation8 + $0x70] ss:$8 sps:$4 sm:$0xff]   ;;  %v2637_v25 = vld [vmem:[#allocation9 + $0xcc] ss:$24 sps:$4 sm:$0xff]  }
  0xb2   :  { %v173_v26 = vld [vmem:[#allocation3] sm:$0xff]  ;;  %v174_v27 = vld [vmem:[#allocation3 + $0x8] sm:$0xff]  ;;  %v2643_v30 = vld [vmem:[#allocation9 + $0xfc] ss:$24 sps:$4 sm:$0xff]   ;;  %vm1112_vm1 = vcmask 130048   ;;  %vm2252_vm2 = vcmask 1041409  }
  0xb3   :  { %289 = vmatpush1.bf16.msra.mxu1 %v2594_v6  ;;  %983 = vmatpush1.bf16.msra.mxu0 %v2621_v15  ;;  %v2612_v28 = vld [vmem:[#allocation9 + $0x4] ss:$24 sps:$4 sm:$0xff]   ;;  %v2639_v29 = vld [vmem:[#allocation9 + $0xc8] ss:$24 sps:$4 sm:$0xff]   ;;  %v175_v31 = vpack.c.bf16 %v174_v27, %v173_v26  ;;  %v2618_v33 = vld [vmem:[#allocation9 + $0x34] ss:$24 sps:$4 sm:$0xff]  }
  0xb4   :  { %290 = vmatprep.subr.bf16.mxu1 %v2595_v7  ;;  %984 = vmatprep.subr.bf16.mxu0 %v2625_v16  ;;  %v2610_v32 = vld [vmem:[#allocation9] ss:$24 sps:$4 sm:$0xff]   ;;  %v2649_v35 = vld [vmem:[#allocation9 + $0x12c] ss:$24 sps:$4 sm:$0xff]   ;;  %v2616_v36 = vld [vmem:[#allocation9 + $0x30] ss:$24 sps:$4 sm:$0xff]  }
  0xb5   :  { %v2645_v34 = vld [vmem:[#allocation9 + $0xf8] ss:$24 sps:$4 sm:$0xff]   ;;  %v2624_v37 = vld [vmem:[#allocation9 + $0x64] ss:$24 sps:$4 sm:$0xff]   ;;  %v2651_v38 = vld [vmem:[#allocation9 + $0x128] ss:$24 sps:$4 sm:$0xff]  }
  0xb6   :  { %v2655_v39 = vld [vmem:[#allocation9 + $0x15c] ss:$24 sps:$4 sm:$0xff]   ;;  %v2622_v40 = vld [vmem:[#allocation9 + $0x60] ss:$24 sps:$4 sm:$0xff]   ;;  %v2661_v43 = vld [vmem:[#allocation9 + $0x18c] ss:$24 sps:$4 sm:$0xff]  }
  0xb7   :  { %291 = vmatpush1.bf16.msra.mxu1 %v2597_v8  ;;  %985 = vmatpush1.bf16.msra.mxu0 %v2627_v19  ;;  %v2630_v41 = vld [vmem:[#allocation9 + $0x94] ss:$24 sps:$4 sm:$0xff]   ;;  %v2657_v42 = vld [vmem:[#allocation9 + $0x158] ss:$24 sps:$4 sm:$0xff]   ;;  %v2636_v45 = vld [vmem:[#allocation9 + $0xc4] ss:$24 sps:$4 sm:$0xff]  }
  0xb8   :  { %292 = vmatprep.subr.bf16.mxu1 %v2598_v9  ;;  %986 = vmatprep.subr.bf16.mxu0 %v2631_v20  ;;  %v2628_v44 = vld [vmem:[#allocation9 + $0x90] ss:$24 sps:$4 sm:$0xff]   ;;  %v2667_v47 = vld [vmem:[#allocation9 + $0x1bc] ss:$24 sps:$4 sm:$0xff]   ;;  %v2634_v48 = vld [vmem:[#allocation9 + $0xc0] ss:$24 sps:$4 sm:$0xff]  }
  0xb9   :  { %v2663_v46 = vld [vmem:[#allocation9 + $0x188] ss:$24 sps:$4 sm:$0xff]   ;;  %v2642_v49 = vld [vmem:[#allocation9 + $0xf4] ss:$24 sps:$4 sm:$0xff]   ;;  %v2669_v50 = vld [vmem:[#allocation9 + $0x1b8] ss:$24 sps:$4 sm:$0xff]  }
  0xba   :  { %v2673_v51 = vld [vmem:[#allocation9 + $0x1ec] ss:$24 sps:$4 sm:$0xff]   ;;  %v2640_v52 = vld [vmem:[#allocation9 + $0xf0] ss:$24 sps:$4 sm:$0xff]   ;;  %v2679_v55 = vld [vmem:[#allocation9 + $0x21c] ss:$24 sps:$4 sm:$0xff]  }
  0xbb   :  { %293 = vmatpush1.bf16.msra.mxu1 %v2600_v12  ;;  %987 = vmatpush1.bf16.msra.mxu0 %v2633_v23  ;;  %v2648_v53 = vld [vmem:[#allocation9 + $0x124] ss:$24 sps:$4 sm:$0xff]   ;;  %v2675_v54 = vld [vmem:[#allocation9 + $0x1e8] ss:$24 sps:$4 sm:$0xff]   ;;  %v2654_v57 = vld [vmem:[#allocation9 + $0x154] ss:$24 sps:$4 sm:$0xff]  }
  0xbc   :  { %294 = vmatprep.subr.bf16.mxu1 %v2601_v13  ;;  %988 = vmatprep.subr.bf16.mxu0 %v2637_v25  ;;  %v2646_v56 = vld [vmem:[#allocation9 + $0x120] ss:$24 sps:$4 sm:$0xff]   ;;  %v2685_v59 = vld [vmem:[#allocation9 + $0x24c] ss:$24 sps:$4 sm:$0xff]   ;;  %v2652_v60 = vld [vmem:[#allocation9 + $0x150] ss:$24 sps:$4 sm:$0xff]  }
  0xbd   :  { %v2681_v58 = vld [vmem:[#allocation9 + $0x218] ss:$24 sps:$4 sm:$0xff]   ;;  %v2660_v61 = vld [vmem:[#allocation9 + $0x184] ss:$24 sps:$4 sm:$0xff]   ;;  %v2687_v62 = vld [vmem:[#allocation9 + $0x248] ss:$24 sps:$4 sm:$0xff]  }
  0xbe   :  { %v2691_v63 = vld [vmem:[#allocation9 + $0x27c] ss:$24 sps:$4 sm:$0xff]   ;;  %v2658_v0 = vld [vmem:[#allocation9 + $0x180] ss:$24 sps:$4 sm:$0xff]   ;;  %v2664_v3 = vld [vmem:[#allocation9 + $0x1b0] ss:$24 sps:$4 sm:$0xff]  }
  0xbf   :  { %295 = vmatpush1.bf16.msra.mxu1 %v2603_v17  ;;  %989 = vmatpush1.bf16.msra.mxu0 %v2639_v29  ;;  %v2666_v1 = vld [vmem:[#allocation9 + $0x1b4] ss:$24 sps:$4 sm:$0xff]   ;;  %v2693_v2 = vld [vmem:[#allocation9 + $0x278] ss:$24 sps:$4 sm:$0xff]   ;;  %v2672_v4 = vld [vmem:[#allocation9 + $0x1e4] ss:$24 sps:$4 sm:$0xff]  }
  0xc0   :  { %296 = vmatprep.subr.bf16.mxu1 %v2604_v18  ;;  %990 = vmatprep.subr.bf16.mxu0 %v2643_v30  ;;  %v2670_v5 = vld [vmem:[#allocation9 + $0x1e0] ss:$24 sps:$4 sm:$0xff]   ;;  %v2678_v6 = vld [vmem:[#allocation9 + $0x214] ss:$24 sps:$4 sm:$0xff]   ;;  %v2676_v7 = vld [vmem:[#allocation9 + $0x210] ss:$24 sps:$4 sm:$0xff]  }
  0xc1   :  { %v2684_v8 = vld [vmem:[#allocation9 + $0x244] ss:$24 sps:$4 sm:$0xff]   ;;  %v2682_v9 = vld [vmem:[#allocation9 + $0x240] ss:$24 sps:$4 sm:$0xff]   ;;  %v2690_v10 = vld [vmem:[#allocation9 + $0x274] ss:$24 sps:$4 sm:$0xff]  }
  0xc2   :  { %v2688_v11 = vld [vmem:[#allocation9 + $0x270] ss:$24 sps:$4 sm:$0xff]   ;;  %v2696_v12 = vld [vmem:[#allocation9 + $0x2a4] ss:$24 sps:$4 sm:$0xff]   ;;  %v2694_v13 = vld [vmem:[#allocation9 + $0x2a0] ss:$24 sps:$4 sm:$0xff]  }
  0xc3   :  { %297 = vmatpush1.bf16.msra.mxu1 %v2606_v21  ;;  %991 = vmatpush1.bf16.msra.mxu0 %v2645_v34  ;;  %v2697_v14 = vld [vmem:[#allocation9 + $0x2ac] ss:$24 sps:$4 sm:$0xff]   ;;  %v2699_v15 = vld [vmem:[#allocation9 + $0x2a8] ss:$24 sps:$4 sm:$0xff]   ;;  %v2703_v18 = vld [vmem:[#allocation9 + $0x2dc] ss:$24 sps:$4 sm:$0xff]   ;;  %v194_v21 = vlaneseq }
  0xc4   :  { %298 = vmatprep.subr.bf16.mxu1 %v2607_v22  ;;  %992 = vmatprep.subr.bf16.mxu0 %v2649_v35  ;;  %v2702_v16 = vld [vmem:[#allocation9 + $0x2d4] ss:$24 sps:$4 sm:$0xff]   ;;  %v2700_v17 = vld [vmem:[#allocation9 + $0x2d0] ss:$24 sps:$4 sm:$0xff]   ;;  %vm2257_vm3 = vcmask 1041408   ;;  %vm2299_vm4 = vcmask 1043459  }
  0xc5   :  { %v2705_v19 = vld [vmem:[#allocation9 + $0x2d8] ss:$24 sps:$4 sm:$0xff]   ;;  %v2708_v20 = vld [vmem:[#allocation9 + $0x14] ss:$24 sps:$4 sm:$0xff]   ;;  %v3406_v22 = vshrl.u32 %v194_v21, 7  ;;  %vm2301_vm5 = vcmask 1045509  }
  0xc6   :  { %vm2303_vm6 = vcmask 1047559  }
  0xc7   :  { %299 = vmatpush1.bf16.msra.mxu1 %v2609_v24  ;;  %993 = vmatpush1.bf16.msra.mxu0 %v2651_v38  ;;  %v3409_v23 = vsub.s32 1, %v3406_v22  ;;  %v192_v24 = vld [vmem:[%s3553_s3] sm:$0x3]  ;;  %v3415_v25 = vsub.s32 0, %v3406_v22 }
  0xc8   :  { %937 = vmatprep.subr.bf16.mxu1 %v2612_v28  ;;  %994 = vmatprep.subr.bf16.mxu0 %v2655_v39  ;;  %v2711_v39 = vld [vmem:[#allocation9 + $0x44] ss:$24 sps:$4 sm:$0xff]  }
  0xc9   :  { %v201_v27 = vrot.slane %v192_v24, %v3409_v23  ;;  %v197_v28 = vrot.slane %v192_v24, %v3415_v25 }
  0xca   :  { %317 = vmatmul.mubr.bf16.vlgmr.msra.gmra.mrb[0].mxu1 %v175_v31 }
  0xcb   :  { %938 = vmatpush1.bf16.msra.mxu1 %v2610_v32  ;;  %995 = vmatpush1.bf16.msra.mxu0 %v2657_v42  ;;  %v2712_v42 = vld [vmem:[#allocation9 + $0x70] ss:$24 sps:$4 sm:$0xff]  }
  0xcc   :  { %939 = vmatprep.subr.bf16.mxu1 %v2618_v33  ;;  %996 = vmatprep.subr.bf16.mxu0 %v2661_v43  ;;  %v2717_v43 = vld [vmem:[#allocation9 + $0xa4] ss:$24 sps:$4 sm:$0xff]  }
  0xcf   :  { %940 = vmatpush1.bf16.msra.mxu1 %v2616_v36  ;;  %997 = vmatpush1.bf16.msra.mxu0 %v2663_v46  ;;  %v2718_v46 = vld [vmem:[#allocation9 + $0xd0] ss:$24 sps:$4 sm:$0xff]  }
  0xd0   :  { %941 = vmatprep.subr.bf16.mxu1 %v2624_v37  ;;  %998 = vmatprep.subr.bf16.mxu0 %v2667_v47  ;;  %v2706_v37 = vld [vmem:[#allocation9 + $0x10] ss:$24 sps:$4 sm:$0xff]   ;;  %v2723_v47 = vld [vmem:[#allocation9 + $0x104] ss:$24 sps:$4 sm:$0xff]  }
  0xd3   :  { %942 = vmatpush1.bf16.msra.mxu1 %v2622_v40  ;;  %999 = vmatpush1.bf16.msra.mxu0 %v2669_v50  ;;  %v2709_v40 = vld [vmem:[#allocation9 + $0x40] ss:$24 sps:$4 sm:$0xff]   ;;  %v2724_v50 = vld [vmem:[#allocation9 + $0x130] ss:$24 sps:$4 sm:$0xff]  }
  0xd4   :  { %943 = vmatprep.subr.bf16.mxu1 %v2630_v41  ;;  %1000 = vmatprep.subr.bf16.mxu0 %v2673_v51  ;;  %v2714_v41 = vld [vmem:[#allocation9 + $0x74] ss:$24 sps:$4 sm:$0xff]   ;;  %v2729_v51 = vld [vmem:[#allocation9 + $0x164] ss:$24 sps:$4 sm:$0xff]  }
  0xd7   :  { %944 = vmatpush1.bf16.msra.mxu1 %v2628_v44  ;;  %1001 = vmatpush1.bf16.msra.mxu0 %v2675_v54  ;;  %v2715_v44 = vld [vmem:[#allocation9 + $0xa0] ss:$24 sps:$4 sm:$0xff]   ;;  %v2730_v54 = vld [vmem:[#allocation9 + $0x190] ss:$24 sps:$4 sm:$0xff]  }
  0xd8   :  { %945 = vmatprep.subr.bf16.mxu1 %v2636_v45  ;;  %1002 = vmatprep.subr.bf16.mxu0 %v2679_v55  ;;  %v2720_v45 = vld [vmem:[#allocation9 + $0xd4] ss:$24 sps:$4 sm:$0xff]   ;;  %v2735_v55 = vld [vmem:[#allocation9 + $0x1c4] ss:$24 sps:$4 sm:$0xff]  }
  0xdb   :  { %946 = vmatpush1.bf16.msra.mxu1 %v2634_v48  ;;  %1003 = vmatpush1.bf16.msra.mxu0 %v2681_v58  ;;  %v2721_v48 = vld [vmem:[#allocation9 + $0x100] ss:$24 sps:$4 sm:$0xff]   ;;  %v2736_v58 = vld [vmem:[#allocation9 + $0x1f0] ss:$24 sps:$4 sm:$0xff]  }
  0xdc   :  { %947 = vmatprep.subr.bf16.mxu1 %v2642_v49  ;;  %1004 = vmatprep.subr.bf16.mxu0 %v2685_v59  ;;  %v2726_v49 = vld [vmem:[#allocation9 + $0x134] ss:$24 sps:$4 sm:$0xff]   ;;  %v2741_v59 = vld [vmem:[#allocation9 + $0x224] ss:$24 sps:$4 sm:$0xff]  }
  0xdf   :  { %948 = vmatpush1.bf16.msra.mxu1 %v2640_v52  ;;  %1005 = vmatpush1.bf16.msra.mxu0 %v2687_v62  ;;  %v2727_v52 = vld [vmem:[#allocation9 + $0x160] ss:$24 sps:$4 sm:$0xff]   ;;  %v2742_v62 = vld [vmem:[#allocation9 + $0x250] ss:$24 sps:$4 sm:$0xff]  }
  0xe0   :  { %949 = vmatprep.subr.bf16.mxu1 %v2648_v53  ;;  %1006 = vmatprep.subr.bf16.mxu0 %v2691_v63  ;;  %v2732_v53 = vld [vmem:[#allocation9 + $0x194] ss:$24 sps:$4 sm:$0xff]   ;;  %v2747_v63 = vld [vmem:[#allocation9 + $0x284] ss:$24 sps:$4 sm:$0xff]  }
  0xe3   :  { %950 = vmatpush1.bf16.msra.mxu1 %v2646_v56  ;;  %1007 = vmatpush1.bf16.msra.mxu0 %v2693_v2  ;;  %v2733_v56 = vld [vmem:[#allocation9 + $0x1c0] ss:$24 sps:$4 sm:$0xff]   ;;  %v2748_v2 = vld [vmem:[#allocation9 + $0x2b0] ss:$24 sps:$4 sm:$0xff]  }
  0xe4   :  { %951 = vmatprep.subr.bf16.mxu1 %v2654_v57  ;;  %1008 = vmatprep.subr.bf16.mxu0 %v2697_v14  ;;  %v2738_v57 = vld [vmem:[#allocation9 + $0x1f4] ss:$24 sps:$4 sm:$0xff]  }
  0xe7   :  { %952 = vmatpush1.bf16.msra.mxu1 %v2652_v60  ;;  %1009 = vmatpush1.bf16.msra.mxu0 %v2699_v15  ;;  %v2739_v60 = vld [vmem:[#allocation9 + $0x220] ss:$24 sps:$4 sm:$0xff]  }
  0xe8   :  { %953 = vmatprep.subr.bf16.mxu1 %v2660_v61  ;;  %1010 = vmatprep.subr.bf16.mxu0 %v2703_v18  ;;  %v2744_v61 = vld [vmem:[#allocation9 + $0x254] ss:$24 sps:$4 sm:$0xff]  }
  0xeb   :  { %954 = vmatpush1.bf16.msra.mxu1 %v2658_v0  ;;  %1011 = vmatpush1.bf16.msra.mxu0 %v2705_v19  ;;  %v2745_v0 = vld [vmem:[#allocation9 + $0x280] ss:$24 sps:$4 sm:$0xff]  }
  0xec   :  { %955 = vmatprep.subr.bf16.mxu1 %v2666_v1  ;;  %v2750_v1 = vld [vmem:[#allocation9 + $0x2b4] ss:$24 sps:$4 sm:$0xff]  }
  0xef   :  { %956 = vmatpush1.bf16.msra.mxu1 %v2664_v3  ;;  %v2753_v3 = vld [vmem:[#allocation9 + $0x2e4] ss:$24 sps:$4 sm:$0xff]  }
  0xf0   :  { %957 = vmatprep.subr.bf16.mxu1 %v2672_v4  ;;  %v2751_v4 = vld [vmem:[#allocation9 + $0x2e0] ss:$24 sps:$4 sm:$0xff]  }
  0xf3   :  { %958 = vmatpush1.bf16.msra.mxu1 %v2670_v5  ;;  %v3170_v5 = vmov 0.0  }
  0xf4   :  { %959 = vmatprep.subr.bf16.mxu1 %v2678_v6  ;;  %2544 = vmatprep.subr.bf16.mxu0 %v3170_v5  ;;  %v437_v6 = vsub.s32 2, %v3406_v22 }
  0xf7   :  { %960 = vmatpush1.bf16.msra.mxu1 %v2676_v7  ;;  %v425_v7 = vld [vmem:[%s3555_s5] sm:$0x3f] }
  0xf8   :  { %961 = vmatprep.subr.bf16.mxu1 %v2684_v8  ;;  %v441_v8 = vsub.s32 3, %v3406_v22 }
  0xfa   :  { %v442_v14 = vrot.slane %v425_v7, %v441_v8 }
  0xfb   :  { %962 = vmatpush1.bf16.msra.mxu1 %v2682_v9  ;;  %v430_v9 = vrot.slane %v425_v7, %v3415_v25 }
  0xfc   :  { %963 = vmatprep.subr.bf16.mxu1 %v2690_v10  ;;  %v438_v10 = vrot.slane %v425_v7, %v437_v6 }
  0xff   :  { %964 = vmatpush1.bf16.msra.mxu1 %v2688_v11 }
 0x100   :  { %965 = vmatprep.subr.bf16.mxu1 %v2696_v12 }
 0x103   :  { %966 = vmatpush1.bf16.msra.mxu1 %v2694_v13  ;;  %v434_v13 = vrot.slane %v425_v7, %v3409_v23 }
 0x104   :  { %967 = vmatprep.subr.bf16.mxu1 %v2702_v16 }
 0x107   :  { %968 = vmatpush1.bf16.msra.mxu1 %v2700_v17 }
 0x108   :  { %1023 = vmatprep.subr.bf16.mxu1 %v2708_v20 }
 0x19d   :  { %v318_v26 = vpop.f32.mrb[0].mxu1 }
 0x19e   :  { %v320_v29 = vpop.f32.mrb[1].mxu1  ;;  %v3425_v35 = vadd.f32 %v318_v26, %v197_v28 }
 0x19f   :  { %v322_v30 = vpop.f32.mrb[2].mxu1  ;;  %v3421_v33 = vadd.f32 %v320_v29, %v201_v27 }
 0x1a0   :  { %v3419_v31 = vadd.f32 %v322_v30, %v197_v28  ;;  %v324_v32 = vpop.f32.mrb[3].mxu1 }
 0x1a1   :  { %v3423_v34 = vadd.f32 %v324_v32, %v201_v27 }
 0x1a2   :  { %v3431_v38 = vpack.c.bf16 %v3419_v31, %v3425_v35 }
 0x1a3   :  { %v328_v36 = vpack.c.bf16 %v3423_v34, %v3421_v33 }
 0x1a5   :  { %969 = vmatprep.mubr.bf16.mxu1 %v328_v36  ;;  %1012 = vmatprep.mubr.bf16.mxu0 %v328_v36 }
 0x1a6   :  { %970 = vmatmul.mubr.bf16.vlgmr.msra.gmra.mrb[4].mxu1 %v3431_v38  ;;  %1013 = vmatmul.mubr.bf16.vlgmr.msra.gmra.mrb[0].mxu0 %v3431_v38 }
 0x1a7   :  { %1024 = vmatpush1.bf16.msra.mxu1 %v2706_v37  ;;  %1055 = vmatprep.mubr.bf16.mxu1 %v328_v36 }
 0x1a8   :  { %1025 = vmatprep.subr.bf16.mxu1 %v2711_v39  ;;  %2546 = vmatprep.mubr.msk.bf16.mxu0 %vm3171_vm0, %v3170_v5 }
 0x1ab   :  { %1026 = vmatpush1.bf16.msra.mxu1 %v2709_v40  ;;  %v445_v40 = vsub.s32 4, %v3406_v22 }
 0x1ac   :  { %1027 = vmatprep.subr.bf16.mxu1 %v2714_v41  ;;  %v449_v41 = vsub.s32 5, %v3406_v22 }
 0x1af   :  { %1028 = vmatpush1.bf16.msra.mxu1 %v2712_v42  ;;  %v446_v42 = vrot.slane %v425_v7, %v445_v40 }
 0x1b0   :  { %1029 = vmatprep.subr.bf16.mxu1 %v2717_v43 }
 0x1b3   :  { %1030 = vmatpush1.bf16.msra.mxu1 %v2715_v44  ;;  %v450_v44 = vrot.slane %v425_v7, %v449_v41 }
 0x1b4   :  { %1031 = vmatprep.subr.bf16.mxu1 %v2720_v45 }
 0x1b7   :  { %1032 = vmatpush1.bf16.msra.mxu1 %v2718_v46 }
 0x1b8   :  { %1033 = vmatprep.subr.bf16.mxu1 %v2723_v47 }
 0x1bb   :  { %1034 = vmatpush1.bf16.msra.mxu1 %v2721_v48 }
 0x1bc   :  { %1035 = vmatprep.subr.bf16.mxu1 %v2726_v49 }
 0x1bf   :  { %1036 = vmatpush1.bf16.msra.mxu1 %v2724_v50 }
 0x1c0   :  { %1037 = vmatprep.subr.bf16.mxu1 %v2729_v51 }
 0x1c3   :  { %1038 = vmatpush1.bf16.msra.mxu1 %v2727_v52 }
 0x1c4   :  { %1039 = vmatprep.subr.bf16.mxu1 %v2732_v53 }
 0x1c7   :  { %1040 = vmatpush1.bf16.msra.mxu1 %v2730_v54  ;;  %v1066_v54 = vld [vmem:[#allocation6] sm:$0xff] }
 0x1c8   :  { %1041 = vmatprep.subr.bf16.mxu1 %v2735_v55 }
 0x1cb   :  { %1042 = vmatpush1.bf16.msra.mxu1 %v2733_v56  ;;  %v1067_v56 = vld [vmem:[#allocation6 + $0x8] sm:$0xff] }
 0x1cc   :  { %1043 = vmatprep.subr.bf16.mxu1 %v2738_v57 }
 0x1cf   :  { %1044 = vmatpush1.bf16.msra.mxu1 %v2736_v58 }
 0x1d0   :  { %1045 = vmatprep.subr.bf16.mxu1 %v2741_v59 }
 0x1d3   :  { %1046 = vmatpush1.bf16.msra.mxu1 %v2739_v60 }
 0x1d4   :  { %1047 = vmatprep.subr.bf16.mxu1 %v2744_v61 }
 0x1d7   :  { %1048 = vmatpush1.bf16.msra.mxu1 %v2742_v62 }
 0x1d8   :  { %1049 = vmatprep.subr.bf16.mxu1 %v2747_v63 }
 0x1db   :  { %1050 = vmatpush1.bf16.msra.mxu1 %v2745_v0 }
 0x1dc   :  { %1051 = vmatprep.subr.bf16.mxu1 %v2750_v1 }
 0x1df   :  { %1052 = vmatpush1.bf16.msra.mxu1 %v2748_v2 }
 0x1e0   :  { %1053 = vmatprep.subr.bf16.mxu1 %v2753_v3 }
 0x1e3   :  { %1054 = vmatpush1.bf16.msra.mxu1 %v2751_v4 }
 0x1e6   :  { %1056 = vmatmul.mubr.bf16.vlgmr.msra.gmra.mrb[8].mxu1 %v3431_v38 }
 0x279   :  { %v971_v11 = vpop.f32.mrb[4].mxu1  ;;  %v1014_v12 = vpop.f32.mrb[0].mxu0 }
 0x27a   :  { %v973_v15 = vpop.f32.mrb[5].mxu1  ;;  %v1016_v16 = vpop.f32.mrb[1].mxu0  ;;  %v972_v19 = vadd.f32 %v971_v11, %v430_v9  ;;  %v1015_v20 = vadd.f32 %v1014_v12, %v438_v10 }
 0x27b   :  { %v975_v17 = vpop.f32.mrb[6].mxu1  ;;  %v1018_v18 = vpop.f32.mrb[2].mxu0  ;;  %v3446_v28 = vadd.f32 %v973_v15, %v434_v13  ;;  %v3448_v29 = vadd.f32 %v1016_v16, %v442_v14 }
 0x27c   :  { %v976_v21 = vadd.f32 %v975_v17, %v430_v9  ;;  %v1019_v24 = vadd.f32 %v1018_v18, %v438_v10  ;;  %v977_v26 = vpop.f32.mrb[7].mxu1  ;;  %v1020_v27 = vpop.f32.mrb[3].mxu0 }
 0x27d   :  { %v3450_v30 = vadd.f32 %v977_v26, %v434_v13  ;;  %v1021_v32 = vadd.f32 %v1020_v27, %v442_v14 }
 0x27e   :  { %v1068_v36 = vpack.c.bf16 %v976_v21, %v972_v19  ;;  %v1069_v37 = vpack.c.bf16 %v1019_v24, %v1015_v20 }
 0x27f   :  { %v1182_v38 = vpack.c.bf16 %v3450_v30, %v3446_v28  ;;  %v1183_v39 = vpack.c.bf16 %v1021_v32, %v3448_v29 }
 0x280   :  { %2545 = vmatpush3.bf16.xpose.msra.mxu0 %v1069_v37 }
 0x281   :  { %2550 = vmatprep.subr.bf16.mxu0 %v3170_v5 }
 0x287   :  { %2547 = vmatmul.mubr.bf16.vlgmr.msra.gmra.mrb[4].mxu0 %v1068_v36 }
 0x288   :  { %2552 = vmatprep.mubr.msk.bf16.mxu0 %vm3171_vm0, %v3170_v5 }
 0x2b9   :  { %v1057_v43 = vpop.f32.mrb[8].mxu1 }
 0x2ba   :  { %v1059_v45 = vpop.f32.mrb[9].mxu1  ;;  %v1058_v47 = vadd.f32 %v1057_v43, %v446_v42 }
 0x2bb   :  { %v1061_v46 = vpop.f32.mrb[10].mxu1  ;;  %v1060_v50 = vadd.f32 %v1059_v45, %v450_v44 }
 0x2bc   :  { %v1062_v48 = vadd.f32 %v1061_v46, %v446_v42  ;;  %v1063_v49 = vpop.f32.mrb[11].mxu1 }
 0x2bd   :  { %v1064_v51 = vadd.f32 %v1063_v49, %v450_v44 }
 0x2be   :  { %v1070_v52 = vpack.c.bf16 %v1062_v48, %v1058_v47  ;;  %v2756_v47 = vld [vmem:[#allocation11 + $0x4] ss:$8 sps:$4 sm:$0xff]  }
 0x2bf   :  { %v1184_v53 = vpack.c.bf16 %v1064_v51, %v1060_v50 }
 0x2c0   :  { %2551 = vmatpush3.bf16.msra.mxu0 %v1070_v52 }
 0x2c1   :  { %2556 = vmatprep.subr.bf16.mxu0 %v3170_v5 }
 0x35a   :  { %v1105_v55 = vpop.f32.mrb[4].mxu0 }
 0x35b   :  { %v1106_v57 = vadd.f32 %v1105_v55, %v1066_v54  ;;  %v2548_v58 = vpop.f32.mrb[5].mxu0 }
 0x35c   :  { %v1108_v59 = vpop.f32.mrb[6].mxu0  ;;  %v2762_v58 = vld [vmem:[#allocation11 + $0x24] ss:$8 sps:$4 sm:$0xff]  }
 0x35d   :  { %v1109_v60 = vadd.f32 %v1108_v59, %v1067_v56  ;;  %v2549_v61 = vpop.f32.mrb[7].mxu0  ;;  %v1113_v62 = vsel %vm1112_vm1, %v1106_v57, -inf  ;;  %v2760_v59 = vld [vmem:[#allocation11 + $0x20] ss:$8 sps:$4 sm:$0xff]  }
 0x35e   :  { %1114 = vmax.xlane.f32.xlu0 %v1113_v62  ;;  %v2763_v61 = vld [vmem:[#allocation11 + $0x30] ss:$8 sps:$4 sm:$0xff]   ;;  %v2768_v62 = vld [vmem:[#allocation11 + $0x44] ss:$8 sps:$4 sm:$0xff]  }
 0x35f   :  { %v1116_v63 = vsel %vm1112_vm1, %v1109_v60, -inf }
 0x362   :  { %1117 = vmax.xlane.f32.xlu0 %v1116_v63  ;;  %v2766_v63 = vld [vmem:[#allocation11 + $0x40] ss:$8 sps:$4 sm:$0xff]  }
 0x3eb   :  { %v1115_v0 = vpop.xlane.xlu0 %1114 }
 0x3ec   :  { %v1119_v1 = vsub.f32 %v1106_v57, %v1115_v0  ;;  %v2757_v57 = vld [vmem:[#allocation11 + $0x10] ss:$8 sps:$4 sm:$0xff]   ;;  %v2771_v0 = vld [vmem:[#allocation11 + $0x54] ss:$8 sps:$4 sm:$0xff]  }
 0x3ee   :  { %v1121_v2 = vmul.f32 1.442695, %v1119_v1  ;;  %v2769_v1 = vld [vmem:[#allocation11 + $0x50] ss:$8 sps:$4 sm:$0xff]  }
 0x3ef   :  { %v1118_v3 = vpop.xlane.xlu0 %1117 }
 0x3f0   :  { %2898 = vpow2.f32 %v1121_v2  ;;  %v1120_v4 = vsub.f32 %v1109_v60, %v1118_v3  ;;  %v2765_v60 = vld [vmem:[#allocation11 + $0x34] ss:$8 sps:$4 sm:$0xff]   ;;  %v2774_v2 = vld [vmem:[#allocation11 + $0x64] ss:$8 sps:$4 sm:$0xff]   ;;  %v2772_v3 = vld [vmem:[#allocation11 + $0x60] ss:$8 sps:$4 sm:$0xff]  }
 0x3f2   :  { %v1123_v6 = vmul.f32 1.442695, %v1120_v4  ;;  %v2777_v4 = vld [vmem:[#allocation11 + $0x74] ss:$8 sps:$4 sm:$0xff]  }
 0x3f4   :  { %2900 = vpow2.f32 %v1123_v6  ;;  %v2775_v6 = vld [vmem:[#allocation11 + $0x70] ss:$8 sps:$4 sm:$0xff]  }
 0x3fa   :  { %v2899_v7 = vpop.eup %2898 }
 0x3fb   :  { %v1125_v8 = vsel %vm1112_vm1, %v2899_v7, 0.0 }
 0x3fc   :  { %1126 = vadd.xlane.f32.xlu1 %v1125_v8  ;;  %v2778_v8 = vld [vmem:[#allocation11 + $0x80] ss:$8 sps:$4 sm:$0xff]  }
 0x3fe   :  { %v2901_v9 = vpop.eup %2900 }
 0x3ff   :  { %v1128_v10 = vsel %vm1112_vm1, %v2901_v9, 0.0 }
 0x400   :  { %1129 = vadd.xlane.f32.xlu1 %v1128_v10  ;;  %v2781_v10 = vld [vmem:[#allocation11 + $0x90] ss:$8 sps:$4 sm:$0xff]  }
 0x489   :  { %v1127_v11 = vpop.xlane.xlu1 %1126 }
 0x48a   :  { %2902 = vrcp.f32 %v1127_v11  ;;  %v2786_v11 = vld [vmem:[#allocation11 + $0xa4] ss:$8 sps:$4 sm:$0xff]  }
 0x48d   :  { %v1130_v12 = vpop.xlane.xlu1 %1129 }
 0x48e   :  { %2904 = vrcp.f32 %v1130_v12  ;;  %v2784_v12 = vld [vmem:[#allocation11 + $0xa0] ss:$8 sps:$4 sm:$0xff]  }
 0x494   :  { %v2903_v13 = vpop.eup %2902 }
 0x495   :  { %v1132_v15 = vmul.f32 %v2903_v13, %v2899_v7  ;;  %v2780_v7 = vld [vmem:[#allocation11 + $0x84] ss:$8 sps:$4 sm:$0xff]   ;;  %v2789_v13 = vld [vmem:[#allocation11 + $0xb4] ss:$8 sps:$4 sm:$0xff]  }
 0x498   :  { %v2905_v14 = vpop.eup %2904 }
 0x499   :  { %v1134_v16 = vmul.f32 %v2905_v14, %v2901_v9  ;;  %v2783_v9 = vld [vmem:[#allocation11 + $0x94] ss:$8 sps:$4 sm:$0xff]   ;;  %v2787_v14 = vld [vmem:[#allocation11 + $0xb0] ss:$8 sps:$4 sm:$0xff]  }
 0x49b   :  { %v1135_v17 = vpack.c.bf16 %v1134_v16, %v1132_v15  ;;  %v2792_v15 = vld [vmem:[#allocation11 + $0xc4] ss:$8 sps:$4 sm:$0xff]   ;;  %v2790_v16 = vld [vmem:[#allocation11 + $0xc0] ss:$8 sps:$4 sm:$0xff]  }
 0x49d   :  { %2553 = vmatmul.mubr.msk.bf16.vlgmr.msra.gmra.mrb[8].mxu0 %vm1112_vm1, %v1135_v17  ;;  %v2795_v17 = vld [vmem:[#allocation11 + $0xd4] ss:$8 sps:$4 sm:$0xff]  }
 0x49e   :  { %2557 = vmatpush3.bf16.xpose.msra.mxu0 %v1183_v39  ;;  %2558 = vmatprep.mubr.msk.bf16.mxu0 %vm3171_vm0, %v3170_v5 }
 0x49f   :  { %2562 = vmatprep.subr.bf16.mxu0 %v3170_v5 }
 0x4a5   :  { %2559 = vmatmul.mubr.bf16.vlgmr.msra.gmra.mrb[12].mxu0 %v1182_v38 }
 0x4a6   :  { %2563 = vmatpush3.bf16.msra.mxu0 %v1184_v53  ;;  %2564 = vmatprep.mubr.msk.bf16.mxu0 %vm3171_vm0, %v3170_v5 }
 0x4a7   :  { %1501 = vmatprep.subr.bf16.mxu0 %v2756_v47  ;;  %v2820_v47 = vld [vmem:[#allocation12 + $0x60] ss:$8 sps:$4 sm:$0xff]  }
 0x570   :  { %v3471_v18 = vpop.f32.mrb[8].mxu0 }
 0x571   :  { %v2554_v19 = vpop.f32.mrb[9].mxu0 }
 0x572   :  { %v3473_v20 = vpop.f32.mrb[10].mxu0  ;;  %v2793_v19 = vld [vmem:[#allocation11 + $0xd0] ss:$8 sps:$4 sm:$0xff]  }
 0x573   :  { %v1180_v21 = vpack.c.bf16 %v3473_v20, %v3471_v18  ;;  %v2555_v24 = vpop.f32.mrb[11].mxu0  ;;  %v2819_v18 = vld [vmem:[#allocation12 + $0x54] ss:$8 sps:$4 sm:$0xff]   ;;  %v2817_v20 = vld [vmem:[#allocation12 + $0x50] ss:$8 sps:$4 sm:$0xff]  }
 0x574   :  { %v2798_v24 = vld [vmem:[#allocation11 + $0xe4] ss:$8 sps:$4 sm:$0xff]  }
 0x578   :  { %v1219_v26 = vpop.f32.mrb[12].mxu0 }
 0x579   :  { %v1220_v27 = vadd.f32 %v1219_v26, %v1066_v54  ;;  %v2560_v28 = vpop.f32.mrb[13].mxu0  ;;  %v2754_v54 = vld [vmem:[#allocation11] ss:$8 sps:$4 sm:$0xff]  }
 0x57a   :  { %v1222_v29 = vpop.f32.mrb[14].mxu0  ;;  %v2796_v26 = vld [vmem:[#allocation11 + $0xe0] ss:$8 sps:$4 sm:$0xff]   ;;  %v2799_v28 = vld [vmem:[#allocation11 + $0xf0] ss:$8 sps:$4 sm:$0xff]  }
 0x57b   :  { %v1223_v30 = vadd.f32 %v1222_v29, %v1067_v56  ;;  %v2561_v32 = vpop.f32.mrb[15].mxu0  ;;  %v1226_v36 = vsel %vm1112_vm1, %v1220_v27, -inf  ;;  %v2759_v56 = vld [vmem:[#allocation11 + $0x14] ss:$8 sps:$4 sm:$0xff]  }
 0x57c   :  { %1227 = vmax.xlane.f32.xlu0 %v1226_v36 }
 0x57d   :  { %v1229_v5 = vsel %vm1112_vm1, %v1223_v30, -inf }
 0x57e   :  { %1230 = vmax.xlane.f32.xlu1 %v1229_v5 }
 0x609   :  { %v1228_v37 = vpop.xlane.xlu0 %1227 }
 0x60a   :  { %v1232_v38 = vsub.f32 %v1220_v27, %v1228_v37  ;;  %v2801_v27 = vld [vmem:[#allocation11 + $0xf4] ss:$8 sps:$4 sm:$0xff]   ;;  %v2804_v37 = vld [vmem:[#allocation12 + $0x4] ss:$8 sps:$4 sm:$0xff]  }
 0x60b   :  { %v1231_v39 = vpop.xlane.xlu1 %1230  ;;  %1835 = vmatprep.subr.bf16.mxu1 %v2804_v37  ;;  %v2886_v37 = vld [vmem:[#allocation15 + $0xc0] ss:$8 sps:$4 sm:$0xff]  }
 0x60c   :  { %v1234_v40 = vmul.f32 1.442695, %v1232_v38  ;;  %v1233_v41 = vsub.f32 %v1223_v30, %v1231_v39  ;;  %v2802_v38 = vld [vmem:[#allocation12] ss:$8 sps:$4 sm:$0xff]   ;;  %v2807_v39 = vld [vmem:[#allocation12 + $0x14] ss:$8 sps:$4 sm:$0xff]  }
 0x60d   :  { %1836 = vmatpush1.bf16.msra.mxu1 %v2802_v38  ;;  %v2891_v38 = vld [vmem:[#allocation15 + $0xd4] ss:$8 sps:$4 sm:$0xff]  }
 0x60e   :  { %2906 = vpow2.f32 %v1234_v40  ;;  %v1236_v42 = vmul.f32 1.442695, %v1233_v41  ;;  %v2805_v40 = vld [vmem:[#allocation12 + $0x10] ss:$8 sps:$4 sm:$0xff]   ;;  %1837 = vmatprep.subr.bf16.mxu1 %v2807_v39  ;;  %v2810_v41 = vld [vmem:[#allocation12 + $0x24] ss:$8 sps:$4 sm:$0xff]  }
 0x60f   :  { %v2889_v39 = vld [vmem:[#allocation15 + $0xd0] ss:$8 sps:$4 sm:$0xff]  }
 0x610   :  { %2908 = vpow2.f32 %v1236_v42  ;;  %v2808_v42 = vld [vmem:[#allocation12 + $0x20] ss:$8 sps:$4 sm:$0xff]  }
 0x611   :  { %1838 = vmatpush1.bf16.msra.mxu1 %v2805_v40  ;;  %v1329_v40 = vld [vmem:[%s3557_s7] sm:$0x3] }
 0x612   :  { %1839 = vmatprep.subr.bf16.mxu1 %v2810_v41  ;;  %v1334_v41 = vrot.slane %v1329_v40, %v3415_v25 }
 0x615   :  { %1840 = vmatpush1.bf16.msra.mxu1 %v2808_v42 }
 0x618   :  { %v2907_v43 = vpop.eup %2906 }
 0x619   :  { %v1238_v44 = vsel %vm1112_vm1, %v2907_v43, 0.0 }
 0x61a   :  { %v2909_v45 = vpop.eup %2908  ;;  %1239 = vadd.xlane.f32.xlu0 %v1238_v44  ;;  %v2811_v44 = vld [vmem:[#allocation12 + $0x30] ss:$8 sps:$4 sm:$0xff]  }
 0x61b   :  { %v1241_v46 = vsel %vm1112_vm1, %v2909_v45, 0.0 }
 0x61c   :  { %1242 = vadd.xlane.f32.xlu1 %v1241_v46  ;;  %v2814_v46 = vld [vmem:[#allocation12 + $0x40] ss:$8 sps:$4 sm:$0xff]  }
 0x6a7   :  { %v1240_v48 = vpop.xlane.xlu0 %1239 }
 0x6a8   :  { %2910 = vrcp.f32 %v1240_v48  ;;  %v2825_v48 = vld [vmem:[#allocation12 + $0x74] ss:$8 sps:$4 sm:$0xff]  }
 0x6a9   :  { %v1243_v49 = vpop.xlane.xlu1 %1242 }
 0x6aa   :  { %2912 = vrcp.f32 %v1243_v49  ;;  %v2823_v49 = vld [vmem:[#allocation12 + $0x70] ss:$8 sps:$4 sm:$0xff]  }
 0x6b2   :  { %v2911_v50 = vpop.eup %2910 }
 0x6b3   :  { %v1245_v52 = vmul.f32 %v2911_v50, %v2907_v43  ;;  %v2813_v43 = vld [vmem:[#allocation12 + $0x34] ss:$8 sps:$4 sm:$0xff]   ;;  %v2828_v50 = vld [vmem:[#allocation12 + $0x84] ss:$8 sps:$4 sm:$0xff]  }
 0x6b4   :  { %v2913_v51 = vpop.eup %2912  ;;  %1841 = vmatprep.subr.bf16.mxu1 %v2813_v43  ;;  %v1338_v43 = vrot.slane %v1329_v40, %v3409_v23 }
 0x6b5   :  { %v1247_v53 = vmul.f32 %v2913_v51, %v2909_v45  ;;  %1842 = vmatpush1.bf16.msra.mxu1 %v2811_v44  ;;  %v2816_v45 = vld [vmem:[#allocation12 + $0x44] ss:$8 sps:$4 sm:$0xff]   ;;  %v2826_v51 = vld [vmem:[#allocation12 + $0x80] ss:$8 sps:$4 sm:$0xff]  }
 0x6b6   :  { %1843 = vmatprep.subr.bf16.mxu1 %v2816_v45 }
 0x6b7   :  { %v1248_v55 = vpack.c.bf16 %v1247_v53, %v1245_v52  ;;  %v2831_v52 = vld [vmem:[#allocation12 + $0x94] ss:$8 sps:$4 sm:$0xff]   ;;  %v2829_v53 = vld [vmem:[#allocation12 + $0x90] ss:$8 sps:$4 sm:$0xff]  }
 0x6b9   :  { %2565 = vmatmul.mubr.msk.bf16.vlgmr.msra.gmra.mrb[16].mxu0 %vm1112_vm1, %v1248_v55  ;;  %1844 = vmatpush1.bf16.msra.mxu1 %v2814_v46  ;;  %v2832_v55 = vld [vmem:[#allocation12 + $0xa0] ss:$8 sps:$4 sm:$0xff]  }
 0x6ba   :  { %1502 = vmatpush1.bf16.msra.mxu0 %v2754_v54  ;;  %1845 = vmatprep.subr.bf16.mxu1 %v2819_v18  ;;  %v2834_v54 = vld [vmem:[#allocation12 + $0xa4] ss:$8 sps:$4 sm:$0xff]  }
 0x6bb   :  { %1503 = vmatprep.subr.bf16.mxu0 %v2759_v56  ;;  %v2837_v56 = vld [vmem:[#allocation12 + $0xb4] ss:$8 sps:$4 sm:$0xff]  }
 0x6bd   :  { %1846 = vmatpush1.bf16.msra.mxu1 %v2817_v20 }
 0x6be   :  { %1504 = vmatpush1.bf16.msra.mxu0 %v2757_v57  ;;  %v2835_v57 = vld [vmem:[#allocation12 + $0xb0] ss:$8 sps:$4 sm:$0xff]  }
 0x6bf   :  { %1505 = vmatprep.subr.bf16.mxu0 %v2762_v58  ;;  %v2840_v58 = vld [vmem:[#allocation12 + $0xc4] ss:$8 sps:$4 sm:$0xff]  }
 0x6c2   :  { %1506 = vmatpush1.bf16.msra.mxu0 %v2760_v59  ;;  %v2838_v59 = vld [vmem:[#allocation12 + $0xc0] ss:$8 sps:$4 sm:$0xff]  }
 0x6c3   :  { %1507 = vmatprep.subr.bf16.mxu0 %v2765_v60  ;;  %v2843_v60 = vld [vmem:[#allocation12 + $0xd4] ss:$8 sps:$4 sm:$0xff]  }
 0x6c6   :  { %1508 = vmatpush1.bf16.msra.mxu0 %v2763_v61  ;;  %v2841_v61 = vld [vmem:[#allocation12 + $0xd0] ss:$8 sps:$4 sm:$0xff]  }
 0x6c7   :  { %1509 = vmatprep.subr.bf16.mxu0 %v2768_v62  ;;  %v2846_v62 = vld [vmem:[#allocation12 + $0xe4] ss:$8 sps:$4 sm:$0xff]  }
 0x6ca   :  { %1510 = vmatpush1.bf16.msra.mxu0 %v2766_v63  ;;  %v2844_v63 = vld [vmem:[#allocation12 + $0xe0] ss:$8 sps:$4 sm:$0xff]  }
 0x6cb   :  { %1511 = vmatprep.subr.bf16.mxu0 %v2771_v0  ;;  %v2849_v0 = vld [vmem:[#allocation12 + $0xf4] ss:$8 sps:$4 sm:$0xff]  }
 0x6ce   :  { %1512 = vmatpush1.bf16.msra.mxu0 %v2769_v1  ;;  %v2847_v1 = vld [vmem:[#allocation12 + $0xf0] ss:$8 sps:$4 sm:$0xff]  }
 0x6cf   :  { %1513 = vmatprep.subr.bf16.mxu0 %v2774_v2  ;;  %v2850_v2 = vld [vmem:[#allocation15] ss:$8 sps:$4 sm:$0xff]  }
 0x6d2   :  { %1514 = vmatpush1.bf16.msra.mxu0 %v2772_v3  ;;  %v2852_v3 = vld [vmem:[#allocation15 + $0x4] ss:$8 sps:$4 sm:$0xff]  }
 0x6d3   :  { %1515 = vmatprep.subr.bf16.mxu0 %v2777_v4  ;;  %v2855_v4 = vld [vmem:[#allocation15 + $0x14] ss:$8 sps:$4 sm:$0xff]  }
 0x6d6   :  { %1516 = vmatpush1.bf16.msra.mxu0 %v2775_v6  ;;  %v2853_v6 = vld [vmem:[#allocation15 + $0x10] ss:$8 sps:$4 sm:$0xff]  }
 0x6d7   :  { %1517 = vmatprep.subr.bf16.mxu0 %v2780_v7  ;;  %v2858_v7 = vld [vmem:[#allocation15 + $0x24] ss:$8 sps:$4 sm:$0xff]  }
 0x6da   :  { %1518 = vmatpush1.bf16.msra.mxu0 %v2778_v8  ;;  %v2856_v8 = vld [vmem:[#allocation15 + $0x20] ss:$8 sps:$4 sm:$0xff]  }
 0x6db   :  { %1519 = vmatprep.subr.bf16.mxu0 %v2783_v9  ;;  %v2861_v9 = vld [vmem:[#allocation15 + $0x34] ss:$8 sps:$4 sm:$0xff]  }
 0x6de   :  { %1520 = vmatpush1.bf16.msra.mxu0 %v2781_v10  ;;  %v2859_v10 = vld [vmem:[#allocation15 + $0x30] ss:$8 sps:$4 sm:$0xff]  }
 0x6df   :  { %1521 = vmatprep.subr.bf16.mxu0 %v2786_v11  ;;  %v2864_v11 = vld [vmem:[#allocation15 + $0x44] ss:$8 sps:$4 sm:$0xff]  }
 0x6e2   :  { %1522 = vmatpush1.bf16.msra.mxu0 %v2784_v12  ;;  %v2862_v12 = vld [vmem:[#allocation15 + $0x40] ss:$8 sps:$4 sm:$0xff]  }
 0x6e3   :  { %1523 = vmatprep.subr.bf16.mxu0 %v2789_v13  ;;  %v2867_v13 = vld [vmem:[#allocation15 + $0x54] ss:$8 sps:$4 sm:$0xff]  }
 0x6e6   :  { %1524 = vmatpush1.bf16.msra.mxu0 %v2787_v14  ;;  %v2865_v14 = vld [vmem:[#allocation15 + $0x50] ss:$8 sps:$4 sm:$0xff]  }
 0x6e7   :  { %1525 = vmatprep.subr.bf16.mxu0 %v2792_v15  ;;  %v2870_v15 = vld [vmem:[#allocation15 + $0x64] ss:$8 sps:$4 sm:$0xff]  }
 0x6ea   :  { %1526 = vmatpush1.bf16.msra.mxu0 %v2790_v16  ;;  %v2868_v16 = vld [vmem:[#allocation15 + $0x60] ss:$8 sps:$4 sm:$0xff]  }
 0x6eb   :  { %1527 = vmatprep.subr.bf16.mxu0 %v2795_v17  ;;  %v2873_v17 = vld [vmem:[#allocation15 + $0x74] ss:$8 sps:$4 sm:$0xff]  }
 0x6ee   :  { %1528 = vmatpush1.bf16.msra.mxu0 %v2793_v19  ;;  %v2871_v19 = vld [vmem:[#allocation15 + $0x70] ss:$8 sps:$4 sm:$0xff]  }
 0x6ef   :  { %1529 = vmatprep.subr.bf16.mxu0 %v2798_v24  ;;  %v2876_v24 = vld [vmem:[#allocation15 + $0x84] ss:$8 sps:$4 sm:$0xff]  }
 0x6f2   :  { %1530 = vmatpush1.bf16.msra.mxu0 %v2796_v26  ;;  %v2874_v26 = vld [vmem:[#allocation15 + $0x80] ss:$8 sps:$4 sm:$0xff]  }
 0x6f3   :  { %1531 = vmatprep.subr.bf16.mxu0 %v2801_v27  ;;  %v2879_v27 = vld [vmem:[#allocation15 + $0x94] ss:$8 sps:$4 sm:$0xff]  }
 0x6f6   :  { %1532 = vmatpush1.bf16.msra.mxu0 %v2799_v28  ;;  %v2877_v28 = vld [vmem:[#allocation15 + $0x90] ss:$8 sps:$4 sm:$0xff]  }
 0x6f7   :  { %2088 = vmatprep.subr.bf16.mxu0 %v2852_v3 }
 0x78c   :  { %v1286_v29 = vpop.f32.mrb[16].mxu0 }
 0x78d   :  { %v2566_v30 = vpop.f32.mrb[17].mxu0 }
 0x78e   :  { %v1289_v32 = vpop.f32.mrb[18].mxu0  ;;  %v2880_v30 = vld [vmem:[#allocation15 + $0xa0] ss:$8 sps:$4 sm:$0xff]  }
 0x78f   :  { %v1293_v36 = vpack.c.bf16 %v1289_v32, %v1286_v29  ;;  %v2567_v5 = vpop.f32.mrb[19].mxu0  ;;  %v2882_v29 = vld [vmem:[#allocation15 + $0xa4] ss:$8 sps:$4 sm:$0xff]   ;;  %v2885_v32 = vld [vmem:[#allocation15 + $0xb4] ss:$8 sps:$4 sm:$0xff]  }
 0x790   :  { %v2888_v5 = vld [vmem:[#allocation15 + $0xc4] ss:$8 sps:$4 sm:$0xff]  }
 0x791   :  { %1533 = vmatprep.mubr.bf16.mxu0 %v1293_v36  ;;  %v2883_v36 = vld [vmem:[#allocation15 + $0xb0] ss:$8 sps:$4 sm:$0xff]  }
 0x792   :  { %1534 = vmatmul.mubr.bf16.vlgmr.msra.gmra.mrb[20].mxu0 %v1180_v21  ;;  %v2822_v21 = vld [vmem:[#allocation12 + $0x64] ss:$8 sps:$4 sm:$0xff]  }
 0x793   :  { %1847 = vmatprep.subr.bf16.mxu1 %v2822_v21  ;;  %2089 = vmatpush1.bf16.msra.mxu0 %v2850_v2 }
 0x794   :  { %1848 = vmatpush1.bf16.msra.mxu1 %v2820_v47  ;;  %2090 = vmatprep.subr.bf16.mxu0 %v2855_v4 }
 0x795   :  { %1849 = vmatprep.subr.bf16.mxu1 %v2825_v48 }
 0x797   :  { %2091 = vmatpush1.bf16.msra.mxu0 %v2853_v6 }
 0x798   :  { %1850 = vmatpush1.bf16.msra.mxu1 %v2823_v49  ;;  %2092 = vmatprep.subr.bf16.mxu0 %v2858_v7 }
 0x799   :  { %1851 = vmatprep.subr.bf16.mxu1 %v2828_v50 }
 0x79b   :  { %2093 = vmatpush1.bf16.msra.mxu0 %v2856_v8 }
 0x79c   :  { %1852 = vmatpush1.bf16.msra.mxu1 %v2826_v51  ;;  %2094 = vmatprep.subr.bf16.mxu0 %v2861_v9 }
 0x79d   :  { %1853 = vmatprep.subr.bf16.mxu1 %v2831_v52 }
 0x79f   :  { %2095 = vmatpush1.bf16.msra.mxu0 %v2859_v10 }
 0x7a0   :  { %1854 = vmatpush1.bf16.msra.mxu1 %v2829_v53  ;;  %2096 = vmatprep.subr.bf16.mxu0 %v2864_v11 }
 0x7a1   :  { %1855 = vmatprep.subr.bf16.mxu1 %v2834_v54 }
 0x7a3   :  { %2097 = vmatpush1.bf16.msra.mxu0 %v2862_v12 }
 0x7a4   :  { %1856 = vmatpush1.bf16.msra.mxu1 %v2832_v55  ;;  %2098 = vmatprep.subr.bf16.mxu0 %v2867_v13 }
 0x7a5   :  { %1857 = vmatprep.subr.bf16.mxu1 %v2837_v56 }
 0x7a7   :  { %2099 = vmatpush1.bf16.msra.mxu0 %v2865_v14 }
 0x7a8   :  { %1858 = vmatpush1.bf16.msra.mxu1 %v2835_v57  ;;  %2100 = vmatprep.subr.bf16.mxu0 %v2870_v15 }
 0x7a9   :  { %1859 = vmatprep.subr.bf16.mxu1 %v2840_v58 }
 0x7ab   :  { %2101 = vmatpush1.bf16.msra.mxu0 %v2868_v16 }
 0x7ac   :  { %1860 = vmatpush1.bf16.msra.mxu1 %v2838_v59  ;;  %2102 = vmatprep.subr.bf16.mxu0 %v2873_v17 }
 0x7ad   :  { %1861 = vmatprep.subr.bf16.mxu1 %v2843_v60 }
 0x7af   :  { %2103 = vmatpush1.bf16.msra.mxu0 %v2871_v19 }
 0x7b0   :  { %1862 = vmatpush1.bf16.msra.mxu1 %v2841_v61  ;;  %2104 = vmatprep.subr.bf16.mxu0 %v2876_v24 }
 0x7b1   :  { %1863 = vmatprep.subr.bf16.mxu1 %v2846_v62 }
 0x7b3   :  { %2105 = vmatpush1.bf16.msra.mxu0 %v2874_v26 }
 0x7b4   :  { %1864 = vmatpush1.bf16.msra.mxu1 %v2844_v63  ;;  %2106 = vmatprep.subr.bf16.mxu0 %v2879_v27 }
 0x7b5   :  { %1865 = vmatprep.subr.bf16.mxu1 %v2849_v0 }
 0x7b7   :  { %2107 = vmatpush1.bf16.msra.mxu0 %v2877_v28 }
 0x7b8   :  { %1866 = vmatpush1.bf16.msra.mxu1 %v2847_v1  ;;  %2108 = vmatprep.subr.bf16.mxu0 %v2882_v29 }
 0x7bb   :  { %2109 = vmatpush1.bf16.msra.mxu0 %v2880_v30 }
 0x7bc   :  { %2110 = vmatprep.subr.bf16.mxu0 %v2885_v32 }
 0x7bf   :  { %2111 = vmatpush1.bf16.msra.mxu0 %v2883_v36 }
 0x7c0   :  { %2112 = vmatprep.subr.bf16.mxu0 %v2888_v5  ;;  %v1593_v5 = vld [vmem:[%s3558_s8] sm:$0x3] }
 0x7c1   :  { %v1602_v40 = vrot.slane %v1593_v5, %v3409_v23 }
 0x7c3   :  { %2113 = vmatpush1.bf16.msra.mxu0 %v2886_v37  ;;  %v1609_v37 = vld [vmem:[%s3559_s9] sm:$0x3] }
 0x7c4   :  { %2114 = vmatprep.subr.bf16.mxu0 %v2891_v38  ;;  %v1598_v38 = vrot.slane %v1593_v5, %v3415_v25 }
 0x7c7   :  { %2115 = vmatpush1.bf16.msra.mxu0 %v2889_v39 }
 0x865   :  { %v1535_v42 = vpop.f32.mrb[20].mxu0 }
 0x866   :  { %v1537_v44 = vpop.f32.mrb[21].mxu0  ;;  %v1536_v46 = vadd.f32 %v1535_v42, %v1334_v41 }
 0x867   :  { %v1539_v45 = vpop.f32.mrb[22].mxu0  ;;  %v1538_v21 = vadd.f32 %v1537_v44, %v1338_v43  ;;  %v1614_v44 = vrot.slane %v1609_v37, %v3415_v25 }
 0x868   :  { %v1540_v18 = vadd.f32 %v1539_v45, %v1334_v41  ;;  %v1541_v20 = vpop.f32.mrb[23].mxu0 }
 0x869   :  { %v1542_v47 = vadd.f32 %v1541_v20, %v1338_v43 }
 0x86a   :  { %v1544_v48 = vadd.f32 %v1540_v18, %v1536_v46 }
 0x86b   :  { %v1551_v49 = vadd.f32 %v1542_v47, %v1538_v21 }
 0x86c   :  { %v1545_v50 = vrot.slane %v1544_v48, 4 }
 0x86d   :  { %v1552_v51 = vrot.slane %v1551_v49, 4 }
 0x86e   :  { %v1546_v52 = vadd.f32 %v1545_v50, %v1544_v48 }
 0x86f   :  { %v1553_v53 = vadd.f32 %v1552_v51, %v1551_v49 }
 0x870   :  { %v1547_v54 = vrot.slane %v1546_v52, 2 }
 0x871   :  { %v1554_v55 = vrot.slane %v1553_v53, 2 }
 0x872   :  { %v1548_v56 = vadd.f32 %v1547_v54, %v1546_v52 }
 0x873   :  { %v1555_v57 = vadd.f32 %v1554_v55, %v1553_v53 }
 0x874   :  { %v1549_v58 = vrot.slane %v1548_v56, 1 }
 0x875   :  { %v1556_v59 = vrot.slane %v1555_v57, 1 }
 0x876   :  { %v1550_v60 = vadd.f32 %v1549_v58, %v1548_v56 }
 0x877   :  { %v1557_v61 = vadd.f32 %v1556_v59, %v1555_v57  ;;  %v2894_v59 = vld [vmem:[#allocation15 + $0xe4] ss:$8 sps:$4 sm:$0xff]  }
 0x878   :  { %v1559_v62 = vmul.f32 0.0625, %v1550_v60  ;;  %2116 = vmatprep.subr.bf16.mxu0 %v2894_v59  ;;  %v2895_v60 = vld [vmem:[#allocation15 + $0xf0] ss:$8 sps:$4 sm:$0xff]  }
 0x879   :  { %v1560_v63 = vmul.f32 0.0625, %v1557_v61 }
 0x87a   :  { %v1561_v0 = vsub.f32 %v1536_v46, %v1559_v62  ;;  %v1563_v1 = vsub.f32 %v1540_v18, %v1559_v62  ;;  %v1618_v18 = vrot.slane %v1609_v37, %v3409_v23 }
 0x87b   :  { %v1562_v2 = vsub.f32 %v1538_v21, %v1560_v63  ;;  %v1564_v3 = vsub.f32 %v1542_v47, %v1560_v63 }
 0x87c   :  { %v1565_v4 = vmul.f32 %v1561_v0, %v1561_v0  ;;  %v1567_v6 = vmul.f32 %v1563_v1, %v1563_v1 }
 0x87d   :  { %v1566_v7 = vmul.f32 %v1562_v2, %v1562_v2  ;;  %v1568_v8 = vmul.f32 %v1564_v3, %v1564_v3 }
 0x87e   :  { %v1569_v9 = vadd.f32 %v1567_v6, %v1565_v4 }
 0x87f   :  { %v1576_v10 = vadd.f32 %v1568_v8, %v1566_v7 }
 0x880   :  { %v1570_v11 = vrot.slane %v1569_v9, 4 }
 0x881   :  { %v1577_v12 = vrot.slane %v1576_v10, 4 }
 0x882   :  { %v1571_v13 = vadd.f32 %v1570_v11, %v1569_v9 }
 0x883   :  { %v1578_v14 = vadd.f32 %v1577_v12, %v1576_v10 }
 0x884   :  { %v1572_v15 = vrot.slane %v1571_v13, 2 }
 0x885   :  { %v1579_v16 = vrot.slane %v1578_v14, 2 }
 0x886   :  { %v1573_v17 = vadd.f32 %v1572_v15, %v1571_v13  ;;  %v1916_v13 = vld [vmem:[#allocation17] sm:$0x3] }
 0x887   :  { %v1580_v19 = vadd.f32 %v1579_v16, %v1578_v14  ;;  %v1921_v14 = vrot.slane %v1916_v13, %v3415_v25  ;;  %v1925_v16 = vrot.slane %v1916_v13, %v3409_v23 }
 0x888   :  { %v1574_v24 = vrot.slane %v1573_v17, 1 }
 0x889   :  { %v1581_v26 = vrot.slane %v1580_v19, 1 }
 0x88a   :  { %v1575_v27 = vadd.f32 %v1574_v24, %v1573_v17 }
 0x88b   :  { %v1582_v28 = vadd.f32 %v1581_v26, %v1580_v19 }
 0x88c   :  { %v1583_v29 = vmul.f32 0.0625, %v1575_v27 }
 0x88d   :  { %v1584_v30 = vmul.f32 0.0625, %v1582_v28 }
 0x88e   :  { %v1585_v32 = vadd.f32 1e-05, %v1583_v29 }
 0x88f   :  { %v1586_v36 = vadd.f32 1e-05, %v1584_v30 }
 0x890   :  { %2914 = vrsqrt.f32 %v1585_v32 }
 0x891   :  { %2916 = vrsqrt.f32 %v1586_v36 }
 0x89a   :  { %v2915_v39 = vpop.eup %2914 }
 0x89b   :  { %v2917_v41 = vpop.eup %2916  ;;  %v1589_v42 = vmul.f32 %v2915_v39, %v1561_v0  ;;  %v1591_v43 = vmul.f32 %v2915_v39, %v1563_v1 }
 0x89c   :  { %v1590_v45 = vmul.f32 %v2917_v41, %v1562_v2  ;;  %v1592_v46 = vmul.f32 %v2917_v41, %v1564_v3 }
 0x89d   :  { %v1605_v20 = vmul.f32 %v1598_v38, %v1589_v42  ;;  %v1607_v21 = vmul.f32 %v1598_v38, %v1591_v43 }
 0x89e   :  { %v1608_v47 = vmul.f32 %v1602_v40, %v1592_v46  ;;  %v1606_v48 = vmul.f32 %v1602_v40, %v1590_v45 }
 0x89f   :  { %v1623_v49 = vadd.f32 %v1614_v44, %v1607_v21  ;;  %v1621_v50 = vadd.f32 %v1614_v44, %v1605_v20 }
 0x8a0   :  { %v1622_v51 = vadd.f32 %v1618_v18, %v1606_v48  ;;  %v1624_v52 = vadd.f32 %v1618_v18, %v1608_v47 }
 0x8a1   :  { %v3501_v53 = vadd.f32 %v1621_v50, %v3425_v35  ;;  %v3504_v54 = vadd.f32 %v1623_v49, %v3419_v31  ;;  %v2892_v35 = vld [vmem:[#allocation15 + $0xe0] ss:$8 sps:$4 sm:$0xff]   ;;  %v2897_v31 = vld [vmem:[#allocation15 + $0xf4] ss:$8 sps:$4 sm:$0xff]  }
 0x8a2   :  { %v3507_v55 = vadd.f32 %v1622_v51, %v3421_v33  ;;  %v3510_v56 = vadd.f32 %v1624_v52, %v3423_v34  ;;  %2117 = vmatpush1.bf16.msra.mxu0 %v2892_v35  ;;  %v1663_v33 = vld [vmem:[#allocation14] sm:$0x3] }
 0x8a3   :  { %v1629_v58 = vpack.c.bf16 %v3504_v54, %v3501_v53  ;;  %2118 = vmatprep.subr.bf16.mxu0 %v2897_v31  ;;  %v1668_v34 = vrot.slane %v1663_v33, %v3415_v25  ;;  %v1672_v61 = vrot.slane %v1663_v33, %v3409_v23 }
 0x8a4   :  { %v1630_v57 = vpack.c.bf16 %v3510_v56, %v3507_v55 }
 0x8a6   :  { %1867 = vmatprep.mubr.bf16.mxu1 %v1630_v57  ;;  %2119 = vmatpush1.bf16.msra.mxu0 %v2895_v60 }
 0x8a7   :  { %1868 = vmatmul.mubr.bf16.vlgmr.msra.gmra.mrb[12].mxu1 %v1629_v58 }
 0x97a   :  { %v1869_v62 = vpop.f32.mrb[12].mxu1 }
 0x97b   :  { %v1870_v63 = vadd.f32 %v1869_v62, %v1668_v34  ;;  %v1871_v0 = vpop.f32.mrb[13].mxu1 }
 0x97c   :  { %v1872_v1 = vadd.f32 %v1871_v0, %v1672_v61  ;;  %v1873_v2 = vpop.f32.mrb[14].mxu1 }
 0x97d   :  { %v1874_v3 = vadd.f32 %v1873_v2, %v1668_v34  ;;  %v1875_v4 = vpop.f32.mrb[15].mxu1  ;;  %v1878_v7 = vmax.f32 %v1870_v63, 0.0 }
 0x97e   :  { %v1876_v6 = vadd.f32 %v1875_v4, %v1672_v61  ;;  %v1879_v9 = vmax.f32 %v1872_v1, 0.0 }
 0x97f   :  { %v1880_v8 = vmax.f32 %v1874_v3, 0.0 }
 0x980   :  { %v1881_v10 = vmax.f32 %v1876_v6, 0.0 }
 0x981   :  { %v1882_v11 = vpack.c.bf16 %v1880_v8, %v1878_v7 }
 0x982   :  { %v1883_v12 = vpack.c.bf16 %v1881_v10, %v1879_v9  ;;  %v2179_v9 = vld [vmem:[%s3564_s14] sm:$0x3]  ;;  %s3173_s14 = smov [#allocation18]  }
 0x983   :  { %v2195_v10 = vld [vmem:[%s3565_s15] sm:$0x3]  ;;  %v2188_v13 = vrot.slane %v2179_v9, %v3409_v23  ;;  %s2313_s15 = sshll.u32 %s3173_s14, 4  ;;  %s2314_s15 = int_to_ptr.vmem [resolvable:$true] %s2313_s15 }
 0x984   :  { %2120 = vmatprep.mubr.bf16.mxu0 %v1883_v12  ;;  %s3122_s6 = scalar_lea.vmem %s2314_s15, 64  ;;  %p3127_p3 = scmp.lt.s32.totalorder %s2314_s15, %s2314_s15 }
 0x985   :  { %2121 = vmatmul.mubr.bf16.vlgmr.msra.gmra.mrb[24].mxu0 %v1882_v11  ;;  %v2184_v11 = vrot.slane %v2179_v9, %v3415_v25  ;;  %v3172_v9 = vmov 1983009808   ;;  %p3123_p2 = scmp.ne.s32.totalorder %s2314_s15, %s3122_s6  ;;  %p3128_p4 = scmp.lt.s32.totalorder %s3122_s6, %s3122_s6 }
 0x987   :  { %p3129_p5 = por %p3128_p4, %p3127_p3 }
 0x989   :  { %p3130_p6 = pnand %p3129_p5, %p3123_p2 }
 0xa58   :  { %v2122_v15 = vpop.f32.mrb[24].mxu0 }
 0xa59   :  { %v2124_v17 = vpop.f32.mrb[25].mxu0  ;;  %v2123_v24 = vadd.f32 %v2122_v15, %v1921_v14 }
 0xa5a   :  { %v2126_v19 = vpop.f32.mrb[26].mxu0  ;;  %v2125_v28 = vadd.f32 %v2124_v17, %v1925_v16  ;;  %v2200_v17 = vrot.slane %v2195_v10, %v3415_v25 }
 0xa5b   :  { %v2127_v26 = vadd.f32 %v2126_v19, %v1921_v14  ;;  %v2128_v27 = vpop.f32.mrb[27].mxu0 }
 0xa5c   :  { %v2129_v29 = vadd.f32 %v2128_v27, %v1925_v16 }
 0xa5d   :  { %v2131_v30 = vadd.f32 %v2127_v26, %v2123_v24 }
 0xa5e   :  { %v2138_v32 = vadd.f32 %v2129_v29, %v2125_v28 }
 0xa5f   :  { %v2132_v36 = vrot.slane %v2131_v30, 4 }
 0xa60   :  { %v2139_v5 = vrot.slane %v2138_v32, 4 }
 0xa61   :  { %v2133_v37 = vadd.f32 %v2132_v36, %v2131_v30 }
 0xa62   :  { %v2140_v38 = vadd.f32 %v2139_v5, %v2138_v32 }
 0xa63   :  { %v2134_v39 = vrot.slane %v2133_v37, 2 }
 0xa64   :  { %v2141_v40 = vrot.slane %v2140_v38, 2 }
 0xa65   :  { %v2135_v41 = vadd.f32 %v2134_v39, %v2133_v37 }
 0xa66   :  { %v2142_v42 = vadd.f32 %v2141_v40, %v2140_v38 }
 0xa67   :  { %v2136_v43 = vrot.slane %v2135_v41, 1 }
 0xa68   :  { %v2143_v44 = vrot.slane %v2142_v42, 1 }
 0xa69   :  { %v2137_v45 = vadd.f32 %v2136_v43, %v2135_v41 }
 0xa6a   :  { %v2144_v46 = vadd.f32 %v2143_v44, %v2142_v42 }
 0xa6b   :  { %v2145_v18 = vmul.f32 0.0625, %v2137_v45 }
 0xa6c   :  { %v2146_v20 = vmul.f32 0.0625, %v2144_v46 }
 0xa6d   :  { %v2147_v21 = vsub.f32 %v2123_v24, %v2145_v18  ;;  %v2149_v47 = vsub.f32 %v2127_v26, %v2145_v18  ;;  %v2204_v26 = vrot.slane %v2195_v10, %v3409_v23  ;;  %v2279_v10 = vunpack.c.l.s4 %v3172_v9 }
 0xa6e   :  { %v2148_v48 = vsub.f32 %v2125_v28, %v2146_v20  ;;  %v2150_v49 = vsub.f32 %v2129_v29, %v2146_v20 }
 0xa6f   :  { %v2151_v50 = vmul.f32 %v2147_v21, %v2147_v21  ;;  %v2153_v51 = vmul.f32 %v2149_v47, %v2149_v47 }
 0xa70   :  { %v2152_v52 = vmul.f32 %v2148_v48, %v2148_v48  ;;  %v2154_v57 = vmul.f32 %v2150_v49, %v2150_v49 }
 0xa71   :  { %v2155_v58 = vadd.f32 %v2153_v51, %v2151_v50 }
 0xa72   :  { %v2162_v59 = vadd.f32 %v2154_v57, %v2152_v52 }
 0xa73   :  { %v2156_v35 = vrot.slane %v2155_v58, 4 }
 0xa74   :  { %v2163_v31 = vrot.slane %v2162_v59, 4 }
 0xa75   :  { %v2157_v60 = vadd.f32 %v2156_v35, %v2155_v58 }
 0xa76   :  { %v2164_v33 = vadd.f32 %v2163_v31, %v2162_v59 }
 0xa77   :  { %v2158_v34 = vrot.slane %v2157_v60, 2 }
 0xa78   :  { %v2165_v61 = vrot.slane %v2164_v33, 2 }
 0xa79   :  { %v2159_v62 = vadd.f32 %v2158_v34, %v2157_v60 }
 0xa7a   :  { %v2166_v63 = vadd.f32 %v2165_v61, %v2164_v33 }
 0xa7b   :  { %v2160_v0 = vrot.slane %v2159_v62, 1 }
 0xa7c   :  { %v2167_v1 = vrot.slane %v2166_v63, 1 }
 0xa7d   :  { %v2161_v2 = vadd.f32 %v2160_v0, %v2159_v62 }
 0xa7e   :  { %v2168_v3 = vadd.f32 %v2167_v1, %v2166_v63 }
 0xa7f   :  { %v2169_v4 = vmul.f32 0.0625, %v2161_v2 }
 0xa80   :  { %v2170_v6 = vmul.f32 0.0625, %v2168_v3 }
 0xa81   :  { %v2171_v7 = vadd.f32 1e-05, %v2169_v4 }
 0xa82   :  { %v2172_v8 = vadd.f32 1e-05, %v2170_v6 }
 0xa83   :  { %2918 = vrsqrt.f32 %v2171_v7 }
 0xa84   :  { %2920 = vrsqrt.f32 %v2172_v8 }
 0xa8d   :  { %v2919_v12 = vpop.eup %2918 }
 0xa8e   :  { %v2921_v14 = vpop.eup %2920  ;;  %v2175_v15 = vmul.f32 %v2919_v12, %v2147_v21  ;;  %v2177_v16 = vmul.f32 %v2919_v12, %v2149_v47 }
 0xa8f   :  { %v2176_v19 = vmul.f32 %v2921_v14, %v2148_v48  ;;  %v2178_v24 = vmul.f32 %v2921_v14, %v2150_v49 }
 0xa90   :  { %v2191_v27 = vmul.f32 %v2184_v11, %v2175_v15  ;;  %v2193_v28 = vmul.f32 %v2184_v11, %v2177_v16  ;;  %v2280_v15 = vunpack.c.0.s8 %v2279_v10 }
 0xa91   :  { %v2192_v29 = vmul.f32 %v2188_v13, %v2176_v19  ;;  %v2194_v30 = vmul.f32 %v2188_v13, %v2178_v24 }
 0xa92   :  { %v2207_v32 = vadd.f32 %v2200_v17, %v2191_v27  ;;  %v2209_v36 = vadd.f32 %v2200_v17, %v2193_v28  ;;  %v2283_v24 = vsub.s32 %v2280_v15, %v3406_v22 }
 0xa93   :  { %v2208_v5 = vadd.f32 %v2204_v26, %v2192_v29  ;;  %v2210_v37 = vadd.f32 %v2204_v26, %v2194_v30 }
 0xa94   :  { %v2211_v38 = vadd.f32 %v2207_v32, %v3501_v53  ;;  %v2213_v39 = vadd.f32 %v2209_v36, %v3504_v54 }
 0xa95   :  { %v2212_v40 = vadd.f32 %v2208_v5, %v3507_v55  ;;  %v2214_v25 = vadd.f32 %v2210_v37, %v3510_v56 }
 0xa96   :  { %v2227_v41 = vrot.slane %v2213_v39, 4  ;;  %v2215_v42 = vrot.slane %v2211_v38, 4 }
 0xa97   :  { %v2233_v43 = vrot.slane %v2214_v25, 4  ;;  %v2221_v23 = vrot.slane %v2212_v40, 4 }
 0xa98   :  { %v2228_v44 = vadd.f32 %v2227_v41, %v2213_v39  ;;  %v2216_v45 = vadd.f32 %v2215_v42, %v2211_v38 }
 0xa99   :  { %v2234_v46 = vadd.f32 %v2233_v43, %v2214_v25  ;;  %v2222_v18 = vadd.f32 %v2221_v23, %v2212_v40 }
 0xa9a   :  { %v2217_v20 = vrot.slane %v2216_v45, 2  ;;  %v2229_v21 = vrot.slane %v2228_v44, 2 }
 0xa9b   :  { %v2223_v47 = vrot.slane %v2222_v18, 2  ;;  %v2235_v48 = vrot.slane %v2234_v46, 2 }
 0xa9c   :  { %v2218_v49 = vadd.f32 %v2217_v20, %v2216_v45  ;;  %v2230_v53 = vadd.f32 %v2229_v21, %v2228_v44 }
 0xa9d   :  { %v2224_v50 = vadd.f32 %v2223_v47, %v2222_v18  ;;  %v2236_v54 = vadd.f32 %v2235_v48, %v2234_v46 }
 0xa9e   :  { %v2219_v51 = vrot.slane %v2218_v49, 1  ;;  %v2231_v55 = vrot.slane %v2230_v53, 1 }
 0xa9f   :  { %v2225_v52 = vrot.slane %v2224_v50, 1  ;;  %v2237_v56 = vrot.slane %v2236_v54, 1 }
 0xaa0   :  { %v2220_v57 = vadd.f32 %v2219_v51, %v2218_v49  ;;  %v2232_v58 = vadd.f32 %v2231_v55, %v2230_v53 }
 0xaa1   :  { %v2226_v59 = vadd.f32 %v2225_v52, %v2224_v50  ;;  %v2238_v35 = vadd.f32 %v2237_v56, %v2236_v54 }
 0xaa2   :  { %v2240_v31 = vmul.f32 0.125, %v2220_v57  ;;  %v2242_v60 = vmul.f32 0.125, %v2232_v58 }
 0xaa3   :  { %v2241_v33 = vmul.f32 0.125, %v2226_v59  ;;  %v2243_v34 = vmul.f32 0.125, %v2238_v35 }
 0xaa4   :  { %v2244_v61 = vmul.f32 %v2240_v31, %v2240_v31  ;;  %v2246_v62 = vmul.f32 %v2242_v60, %v2242_v60 }
 0xaa5   :  { %v2245_v63 = vmul.f32 %v2241_v33, %v2241_v33  ;;  %v2247_v0 = vmul.f32 %v2243_v34, %v2243_v34 }
 0xaa6   :  { %v2253_v1 = vsel %vm2252_vm2, %v2246_v62, %v2244_v61 }
 0xaa7   :  { %v2254_v2 = vsel %vm2252_vm2, %v2247_v0, %v2245_v63  ;;  %v2258_v3 = vsel %vm2257_vm3, %v2253_v1, 0.0 }
 0xaa8   :  { %v2259_v4 = vsel %vm2257_vm3, %v2254_v2, 0.0 }
 0xaa9   :  { %v2260_v6 = vadd.f32 %v2259_v4, %v2258_v3 }
 0xaab   :  { %2261 = vadd.xlane.f32.xlu0 %v2260_v6 }
 0xb38   :  { %v2262_v7 = vpop.xlane.xlu0 %2261 }
 0xb39   :  { %v2263_v8 = vmax.f32 %v2262_v7, 1e-24 }
 0xb3b   :  { %2922 = vrsqrt.f32 %v2263_v8 }
 0xb45   :  { %v2923_v11 = vpop.eup %2922 }
 0xb46   :  { %v2266_v12 = vrot.slane %v2923_v11, 1  ;;  %v2269_v13 = vmul.f32 %v2923_v11, %v2240_v31  ;;  %v2270_v14 = vmul.f32 %v2923_v11, %v2241_v33 }
 0xb48   :  { %v2271_v16 = vmul.f32 %v2266_v12, %v2242_v60  ;;  %v2272_v17 = vmul.f32 %v2266_v12, %v2243_v34  ;;  %v2277_v19 = vcombine.low %v2269_v13, %v2270_v14 }
 0xb4a   :  { %v2285_v26 = vcombine.low %v2271_v16, %v2272_v17  ;;  %v2284_v28 = vrot.slane %v2277_v19, %v2283_v24 }
 0xb4c   :  { %v2292_v27 = vrot.slane %v2285_v26, %v2283_v24 }
 0xb4e   :  { %v2297_v29 = vrot.slane %v2292_v27, 7 }
 0xb50   :  { %v2298_v30 = vsel %vm2252_vm2, %v2297_v29, %v2284_v28 }
 0xb51   :  { %v2300_v32 = vsel %vm2299_vm4, %v2297_v29, %v2298_v30 }
 0xb52   :  { %v2302_v36 = vsel %vm2301_vm5, %v2297_v29, %v2300_v32 }
 0xb53   :  { %v2304_v5 = vsel %vm2303_vm6, %v2297_v29, %v2302_v36 }
 0xb54   :  { %2306 = vst [vmem:[#allocation18] sm:$0xf] %v2304_v5 }
 0xb55   :  { %3133 = shalt.err (!%p3130_p6)
}
 0xb56   :  { %s3134_s27 = scalar_lea.hbm %s3566_s16, 64 }
 0xb57   :  { %p3135_p7 = scmp.ne.s32.totalorder %s3566_s16, %s3134_s27  ;;  %p3138_p8 = scmp.lt.u32.totalorder %s3134_s27, %s3566_s16 }
 0xb59   :  { %p3140_p9 = pnand %p3138_p8, %p3135_p7 }
 0xb5b   :  { %3143 = shalt.err (!%p3140_p9)
}
 0xb5c   :  { %2316 = dma.vmem_to_hbm [thread:$0]  %s2314_s15, 64, %s3566_s16, [#allocation5]  }
 0xb5d   :  { %3154 = dma.done.wait [#allocation5], 64  }
 0xb5e   :  { %3155 = vsyncadd [#allocation5], 4294967232 }
 0xb5f   :  { %2320 = vsyncpa [#allocation4], 1 }
 0xb60   :  { %2321 = vsyncpa [#allocation7], 1 }
 0xb61   :  { %2322 = vsyncpa [#allocation10], 1 }
 0xb62   :  { %2323 = vsyncpa [#allocation13], 1 }
 0xb63   :  { %2324 = vsyncpa [#allocation16], 1 }
 0xb64   :  { %2325 = vsyncpa [#allocation5], 1 }

</bundles_post_ra>
